<compile_context>
chip_gen: v6e
topology: v6e:2x2x1
jax: 0.10.0
libtpu: 0.0.40
codegen_flags: <defaults>
</compile_context>

<pallas_src>
import math
import functools

import jax
import jax.numpy as jnp
from jax.experimental import pallas as pl
from jax.experimental.pallas import tpu as pltpu


MATMUL_DTYPE = jnp.bfloat16   # MXU operand dtype
ACC_DTYPE = jnp.float32       # accumulation / statistics dtype
NEG_INF = -1e9


# ----------------------------------------------------------------------------
# In-kernel helpers
# ----------------------------------------------------------------------------

def _layer_norm(x, w, b, eps):
    # Matches the reference LayerNorm: torch.std is unbiased (divide by D-1)
    # and eps is added to the std, not the variance.
    d = x.shape[-1]
    mean = jnp.mean(x, axis=-1, keepdims=True)
    var = jnp.sum((x - mean) ** 2, axis=-1, keepdims=True) / (d - 1)
    inv = pl.reciprocal(jnp.sqrt(var) + eps, approx=True)   # divide on the EUP slot
    return w * (x - mean) * inv + b


def _split_heads(x2d, num_head, d_k):
    # (T, H*d_k) -> (H, T, d_k): leading head axis so every per-head matmul
    # becomes one batched dot (no lane-masked per-head slicing).
    t = x2d.shape[0]
    return jnp.swapaxes(x2d.reshape(t, num_head, d_k), 0, 1)


def _mha_core(q, k, v, mask, wo3, bo):
    """Head-batched attention + output projection.

    q: (H, Tq, d_k) bf16 (already scaled)   k, v: (H, Tk, d_k) bf16
    mask: (mT, Tk) f32 with 0 = masked (broadcasts over heads / queries)
    wo3: (H, d_k, D) bf16    bo: (1, D) f32
    Returns (Tq, D) f32.
    """
    s = jnp.einsum('hqd,hkd->hqk', q, k,
                   preferred_element_type=ACC_DTYPE)            # (H, Tq, Tk) f32
    s = jnp.where(mask < 0.5, NEG_INF, s)                       # in-kernel mask broadcast
    m = jnp.max(s, axis=-1, keepdims=True)
    e = jnp.exp(s - m)
    denom = jnp.sum(e, axis=-1, keepdims=True)
    p = (e * pl.reciprocal(denom, approx=True)).astype(MATMUL_DTYPE)
    ctx = jnp.einsum('hqk,hkd->hqd', p, v,
                     preferred_element_type=ACC_DTYPE)          # (H, Tq, d_k) f32
    # Output projection as per-head contraction against wo reshaped (H, d_k, D),
    # summed over heads (== concat(heads) @ wo); avoids a merge-transpose.
    out_h = jnp.einsum('hqd,hdn->hqn', ctx.astype(MATMUL_DTYPE), wo3,
                       preferred_element_type=ACC_DTYPE)        # (H, Tq, D) f32
    return jnp.sum(out_h, axis=0) + bo


# ----------------------------------------------------------------------------
# Kernels
# ----------------------------------------------------------------------------

def _self_attn_ln_kernel(num_head, d_k, scale, eps,
                         x_ref, wqkv_ref, bqkv_ref, wo3_ref, bo_ref, mask_ref,
                         lnw_ref, lnb_ref, o_ref):
    """LayerNorm(x + SelfMHA(x, x, x, mask)) for one batch element."""
    x = x_ref[...]                                              # (T, D) f32
    d = num_head * d_k
    qkv = jnp.dot(x.astype(MATMUL_DTYPE), wqkv_ref[...],
                  preferred_element_type=ACC_DTYPE) + bqkv_ref[...]   # (T, 3D) f32
    q = _split_heads((qkv[:, :d] * scale).astype(MATMUL_DTYPE), num_head, d_k)
    k = _split_heads(qkv[:, d:2 * d].astype(MATMUL_DTYPE), num_head, d_k)
    v = _split_heads(qkv[:, 2 * d:].astype(MATMUL_DTYPE), num_head, d_k)
    out = _mha_core(q, k, v, mask_ref[...], wo3_ref[...], bo_ref[...])
    o_ref[...] = _layer_norm(x + out, lnw_ref[...], lnb_ref[...], eps)


def _cross_attn_ln_kernel(num_head, d_k, scale, eps,
                          x_ref, mem_ref, wq_ref, bq_ref, wkv_ref, bkv_ref,
                          wo3_ref, bo_ref, mask_ref, lnw_ref, lnb_ref, o_ref):
    """LayerNorm(x + SrcMHA(x, memory, memory, mask)) for one batch element."""
    x = x_ref[...]                                              # (T, D) f32
    mem = mem_ref[...]                                          # (S, D) f32
    d = num_head * d_k
    qp = jnp.dot(x.astype(MATMUL_DTYPE), wq_ref[...],
                 preferred_element_type=ACC_DTYPE) + bq_ref[...]      # (T, D) f32
    kvp = jnp.dot(mem.astype(MATMUL_DTYPE), wkv_ref[...],
                  preferred_element_type=ACC_DTYPE) + bkv_ref[...]    # (S, 2D) f32
    q = _split_heads((qp * scale).astype(MATMUL_DTYPE), num_head, d_k)
    k = _split_heads(kvp[:, :d].astype(MATMUL_DTYPE), num_head, d_k)
    v = _split_heads(kvp[:, d:].astype(MATMUL_DTYPE), num_head, d_k)
    out = _mha_core(q, k, v, mask_ref[...], wo3_ref[...], bo_ref[...])
    o_ref[...] = _layer_norm(x + out, lnw_ref[...], lnb_ref[...], eps)


def _ffn_ln_kernel(eps, x_ref, w1_ref, b1_ref, w2_ref, b2_ref,
                   lnw_ref, lnb_ref, o_ref):
    """LayerNorm(x + W2(ReLU(W1 x))) for one tile of rows."""
    x = x_ref[...]                                              # (rows, D) f32
    h = jnp.dot(x.astype(MATMUL_DTYPE), w1_ref[...],
                preferred_element_type=ACC_DTYPE) + b1_ref[...]
    h = jnp.maximum(h, 0.0)                                     # ReLU (dropout = identity)
    y = jnp.dot(h.astype(MATMUL_DTYPE), w2_ref[...],
                preferred_element_type=ACC_DTYPE) + b2_ref[...]
    o_ref[...] = _layer_norm(x + y, lnw_ref[...], lnb_ref[...], eps)


# ----------------------------------------------------------------------------
# Wrappers (pallas_call setup)
# ----------------------------------------------------------------------------

def _prep_mask(mask, batch):
    """Keep the mask at its NATIVE (un-broadcast) shape; only align batch dim."""
    mask = jnp.asarray(mask, jnp.float32)
    if mask.ndim == 2:
        mask = mask[None]
    return jnp.broadcast_to(mask, (batch,) + mask.shape[1:])


def self_attention_block(x, mask, p, num_head, eps=1e-6):
    """x: (B, T, D); mask (B|1, T|1, T). Returns LN1(x + SelfMHA(x,x,x,mask))."""
    B, T, D = x.shape
    d_k = D // num_head
    scale = 1.0 / math.sqrt(d_k)
    mask = _prep_mask(mask, B)                   # (B, mT, T), no (B,T,T) f32 blowup
    mT = mask.shape[1]
    kern = functools.partial(_self_attn_ln_kernel, num_head, d_k, scale, eps)
    return pl.pallas_call(
        kern,
        out_shape=jax.ShapeDtypeStruct((B, T, D), jnp.float32),
        grid=(B,),
        in_specs=[
            pl.BlockSpec((None, T, D), lambda b: (b, 0, 0)),           # x
            pl.BlockSpec((D, 3 * D), lambda b: (0, 0)),                # wqkv (resident)
            pl.BlockSpec((1, 3 * D), lambda b: (0, 0)),                # bqkv
            pl.BlockSpec((num_head, d_k, D), lambda b: (0, 0, 0)),     # wo (H,d_k,D)
            pl.BlockSpec((1, D), lambda b: (0, 0)),                    # bo
            pl.BlockSpec((None, mT, T), lambda b: (b, 0, 0)),          # mask (native)
            pl.BlockSpec((1, D), lambda b: (0, 0)),                    # ln w
            pl.BlockSpec((1, D), lambda b: (0, 0)),                    # ln b
        ],
        out_specs=pl.BlockSpec((None, T, D), lambda b: (b, 0, 0)),
        compiler_params=pltpu.CompilerParams(
            dimension_semantics=("parallel",)),
    )(x, p["wqkv"], p["bqkv"], p["wo3"], p["bo"], mask, p["ln_w"], p["ln_b"])


def cross_attention_block(x, memory, mask, p, num_head, eps=1e-6):
    """x: (B, T, D), memory: (B, S, D); mask (B|1, T|1, S)."""
    B, T, D = x.shape
    S = memory.shape[1]
    d_k = D // num_head
    scale = 1.0 / math.sqrt(d_k)
    mask = _prep_mask(mask, B)                   # (B, mT, S) native shape
    mT = mask.shape[1]
    kern = functools.partial(_cross_attn_ln_kernel, num_head, d_k, scale, eps)
    return pl.pallas_call(
        kern,
        out_shape=jax.ShapeDtypeStruct((B, T, D), jnp.float32),
        grid=(B,),
        in_specs=[
            pl.BlockSpec((None, T, D), lambda b: (b, 0, 0)),           # x
            pl.BlockSpec((None, S, D), lambda b: (b, 0, 0)),           # memory
            pl.BlockSpec((D, D), lambda b: (0, 0)),                    # wq (resident)
            pl.BlockSpec((1, D), lambda b: (0, 0)),                    # bq
            pl.BlockSpec((D, 2 * D), lambda b: (0, 0)),                # wkv (resident)
            pl.BlockSpec((1, 2 * D), lambda b: (0, 0)),                # bkv
            pl.BlockSpec((num_head, d_k, D), lambda b: (0, 0, 0)),     # wo (H,d_k,D)
            pl.BlockSpec((1, D), lambda b: (0, 0)),                    # bo
            pl.BlockSpec((None, mT, S), lambda b: (b, 0, 0)),          # mask (native)
            pl.BlockSpec((1, D), lambda b: (0, 0)),                    # ln w
            pl.BlockSpec((1, D), lambda b: (0, 0)),                    # ln b
        ],
        out_specs=pl.BlockSpec((None, T, D), lambda b: (b, 0, 0)),
        compiler_params=pltpu.CompilerParams(
            dimension_semantics=("parallel",)),
    )(x, memory, p["wq"], p["bq"], p["wkv"], p["bkv"],
      p["wo3"], p["bo"], mask, p["ln_w"], p["ln_b"])


def _pick_row_tile(n, cap):
    """Largest legal row tile: n itself if it fits, else the largest divisor of n
    that is <= cap and a multiple of 8 (keeps the (8,128) tiling rule)."""
    if n <= cap:
        return n
    for r in range(min(cap, n), 0, -1):
        if n % r == 0 and r % 8 == 0:
            return r
    return n   # degenerate fallback: single block


def ffn_block(x, p, eps=1e-6, row_block=512):
    """x: (B, T, D). Returns LN(x + FFN(x)); rows tiled, weights resident."""
    B, T, D = x.shape
    N = B * T
    Dff = p["w1"].shape[1]
    x2 = x.reshape(N, D)
    rows = _pick_row_tile(N, row_block)
    kern = functools.partial(_ffn_ln_kernel, eps)
    y = pl.pallas_call(
        kern,
        out_shape=jax.ShapeDtypeStruct((N, D), jnp.float32),
        grid=(N // rows,),
        in_specs=[
            pl.BlockSpec((rows, D), lambda i: (i, 0)),                 # x tile
            pl.BlockSpec((D, Dff), lambda i: (0, 0)),                  # w1 (resident)
            pl.BlockSpec((1, Dff), lambda i: (0, 0)),                  # b1
            pl.BlockSpec((Dff, D), lambda i: (0, 0)),                  # w2 (resident)
            pl.BlockSpec((1, D), lambda i: (0, 0)),                    # b2
            pl.BlockSpec((1, D), lambda i: (0, 0)),                    # ln w
            pl.BlockSpec((1, D), lambda i: (0, 0)),                    # ln b
        ],
        out_specs=pl.BlockSpec((rows, D), lambda i: (i, 0)),
        compiler_params=pltpu.CompilerParams(
            dimension_semantics=("parallel",)),
    )(x2, p["w1"], p["b1"], p["w2"], p["b2"], p["ln_w"], p["ln_b"])
    return y.reshape(B, T, D)


# ----------------------------------------------------------------------------
# Module-level composition (mirrors the PyTorch forward exactly, including
# layer_norm2 reused for the FF residual and layer_norm3 being unused).
# ----------------------------------------------------------------------------

def decoder_layer(x, memory, src_mask, tgt_mask, params, num_head):
    x = self_attention_block(x, tgt_mask, params["self_block"], num_head)
    x = cross_attention_block(x, memory, src_mask, params["src_block"], num_head)
    x = ffn_block(x, params["ff_block"])
    return x


# ----------------------------------------------------------------------------
# Deterministic parameter initialization + fusion-friendly preparation
# ----------------------------------------------------------------------------

def init_params(key, d_model, d_ff, size):
    keys = jax.random.split(key, 4)

    def lin(k, din, dout):
        kw, kb = jax.random.split(k)
        w = jax.random.normal(kw, (din, dout), jnp.float32) * 0.1
        b = jax.random.normal(kb, (1, dout), jnp.float32) * 0.1
        return w, b

    def mha(k):
        k1, k2, k3, k4 = jax.random.split(k, 4)
        wq, bq = lin(k1, d_model, d_model)
        wk, bk = lin(k2, d_model, d_model)
        wv, bv = lin(k3, d_model, d_model)
        wo, bo = lin(k4, d_model, d_model)
        return dict(wq=wq, bq=bq, wk=wk, bk=bk, wv=wv, bv=bv, wo=wo, bo=bo)

    w1, b1 = lin(keys[2], d_model, d_ff)
    w2, b2 = lin(keys[3], d_ff, d_model)

    ln = lambda: dict(w=jnp.ones((1, size), jnp.float32),
                      b=jnp.zeros((1, size), jnp.float32))

    return dict(
        self_att=mha(keys[0]),
        src_att=mha(keys[1]),
        ff=dict(w1=w1, b1=b1, w2=w2, b2=b2),
        ln1=ln(),
        ln2=ln(),
        ln3=ln(),  # present in module, unused in forward (kept for parity)
    )


def prepare_params(raw, num_head):
    """One-time prep: concat QKV / KV weights, reshape wo to (H, d_k, D), cast bf16."""
    cast = lambda w: w.astype(MATMUL_DTYPE)
    d_model = raw["self_att"]["wq"].shape[0]
    d_k = d_model // num_head
    wo3 = lambda wo: cast(wo.reshape(num_head, d_k, d_model))
    sa, ca, ff = raw["self_att"], raw["src_att"], raw["ff"]
    self_block = dict(
        wqkv=cast(jnp.concatenate([sa["wq"], sa["wk"], sa["wv"]], axis=1)),
        bqkv=jnp.concatenate([sa["bq"], sa["bk"], sa["bv"]], axis=1),
        wo3=wo3(sa["wo"]), bo=sa["bo"],
        ln_w=raw["ln1"]["w"], ln_b=raw["ln1"]["b"])
    src_block = dict(
        wq=cast(ca["wq"]), bq=ca["bq"],
        wkv=cast(jnp.concatenate([ca["wk"], ca["wv"]], axis=1)),
        bkv=jnp.concatenate([ca["bk"], ca["bv"]], axis=1),
        wo3=wo3(ca["wo"]), bo=ca["bo"],
        ln_w=raw["ln2"]["w"], ln_b=raw["ln2"]["b"])
    ff_block = dict(
        w1=cast(ff["w1"]), b1=ff["b1"], w2=cast(ff["w2"]), b2=ff["b2"],
        ln_w=raw["ln2"]["w"], ln_b=raw["ln2"]["b"])   # module reuses layer_norm2
    return dict(self_block=self_block, src_block=src_block, ff_block=ff_block)


# ----------------------------------------------------------------------------
# Pure-JAX reference (mirrors the PyTorch module, f32) for a tolerance check
# ----------------------------------------------------------------------------

def reference_decoder_layer(x, memory, src_mask, tgt_mask, raw, num_head, eps=1e-6):
    def ln(t, p):
        mean = t.mean(-1, keepdims=True)
        var = ((t - mean) ** 2).sum(-1, keepdims=True) / (t.shape[-1] - 1)
        return p["w"] * (t - mean) / (jnp.sqrt(var) + eps) + p["b"]

    def mha(q_in, kv_in, mask, p):
        B, _, d_model = q_in.shape
        d_k = d_model // num_head

        def proj(t, w, b):
            return (t @ w + b).reshape(B, -1, num_head, d_k).transpose(0, 2, 1, 3)

        q = proj(q_in, p["wq"], p["bq"])
        k = proj(kv_in, p["wk"], p["bk"])
        v = proj(kv_in, p["wv"], p["bv"])
        s = jnp.einsum('bhqd,bhkd->bhqk', q, k) / math.sqrt(d_k)
        s = jnp.where(mask[:, None] == 0, -1e9, s)
        p_attn = jax.nn.softmax(s, axis=-1)
        ctx = jnp.einsum('bhqk,bhkd->bhqd', p_attn, v)
        ctx = ctx.transpose(0, 2, 1, 3).reshape(B, -1, d_model)
        return ctx @ p["wo"] + p["bo"]

    x = ln(x + mha(x, x, tgt_mask, raw["self_att"]), raw["ln1"])
    x = ln(x + mha(x, memory, src_mask, raw["src_att"]), raw["ln2"])
    ff = raw["ff"]
    h = jnp.maximum(x @ ff["w1"] + ff["b1"], 0.0)
    x = ln(x + (h @ ff["w2"] + ff["b2"]), raw["ln2"])
    return x


# ----------------------------------------------------------------------------
# Main
# ----------------------------------------------------------------------------

if __name__ == "__main__":
    B, T, S = 2, 8, 8
    d_model = 32
    d_ff = 64
    num_head = 4
    size = d_model

    key = jax.random.PRNGKey(0)
    k_p, k_x, k_m = jax.random.split(key, 3)

    raw_params = init_params(k_p, d_model, d_ff, size)
    params = prepare_params(raw_params, num_head)

    x = jax.random.normal(k_x, (B, T, d_model), jnp.float32)
    memory = jax.random.normal(k_m, (B, S, d_model), jnp.float32)

    # tgt_mask: causal (B, T, T); src_mask: all-ones at its NATIVE shape (B, 1, S)
    tgt_mask = jnp.broadcast_to(
        jnp.tril(jnp.ones((T, T), jnp.float32)), (B, T, T))
    src_mask = jnp.ones((B, 1, S), jnp.float32)

    fwd = jax.jit(functools.partial(decoder_layer, num_head=num_head))
    out = fwd(x, memory, src_mask, tgt_mask, params)
    out = jax.block_until_ready(out)

    assert out.shape == (B, T, d_model)
    assert bool(jnp.all(jnp.isfinite(out)))

    # Numerics sanity check vs. the f32 reference (bf16 MXU operands + approx
    # reciprocals => relaxed tolerance).
    ref = reference_decoder_layer(x, memory, src_mask, tgt_mask, raw_params, num_head)
    assert bool(jnp.allclose(out, ref, atol=1e-1, rtol=1e-1))

    print("KERNEL_OK")
</pallas_src>

<mosaic_0001>
module attributes {stable_mosaic.version = 11 : i64} {
  func.func @_self_attn_ln_kernel(%arg0: i32, %arg1: memref<1x8x32xf32, #tpu.memory_space<vmem>>, %arg2: memref<32x96xbf16, #tpu.memory_space<vmem>>, %arg3: memref<1x96xf32, #tpu.memory_space<vmem>>, %arg4: memref<4x8x32xbf16, #tpu.memory_space<vmem>>, %arg5: memref<1x32xf32, #tpu.memory_space<vmem>>, %arg6: memref<1x8x8xf32, #tpu.memory_space<vmem>>, %arg7: memref<1x32xf32, #tpu.memory_space<vmem>>, %arg8: memref<1x32xf32, #tpu.memory_space<vmem>>, %arg9: memref<1x8x32xf32, #tpu.memory_space<vmem>>) attributes {dimension_semantics = [#tpu.dimension_semantics<parallel>], iteration_bounds = array<i64: 2>, scalar_prefetch = 0 : i64, scratch_operands = 0 : i64, tpu.core_type = #tpu.core_type<tc>, window_params = [{transform_indices = @transform_0, window_bounds = array<i64: 1, 8, 32>}, {pipeline_mode = #tpu.pipeline_mode<synchronous>, transform_indices = @transform_1, window_bounds = array<i64: 32, 96>}, {pipeline_mode = #tpu.pipeline_mode<synchronous>, transform_indices = @transform_2, window_bounds = array<i64: 1, 96>}, {pipeline_mode = #tpu.pipeline_mode<synchronous>, transform_indices = @transform_3, window_bounds = array<i64: 4, 8, 32>}, {pipeline_mode = #tpu.pipeline_mode<synchronous>, transform_indices = @transform_4, window_bounds = array<i64: 1, 32>}, {transform_indices = @transform_5, window_bounds = array<i64: 1, 8, 8>}, {pipeline_mode = #tpu.pipeline_mode<synchronous>, transform_indices = @transform_6, window_bounds = array<i64: 1, 32>}, {pipeline_mode = #tpu.pipeline_mode<synchronous>, transform_indices = @transform_7, window_bounds = array<i64: 1, 32>}, {transform_indices = @transform_8, window_bounds = array<i64: 1, 8, 32>}]} {
    %c0 = arith.constant 0 : index
    %c0_0 = arith.constant 0 : index
    %c0_1 = arith.constant 0 : index
    %0 = vector.load %arg1[%c0, %c0_0, %c0_1] : memref<1x8x32xf32, #tpu.memory_space<vmem>>, vector<1x8x32xf32>
    %1 = vector.shape_cast %0 : vector<1x8x32xf32> to vector<8x32xf32>
    %2 = arith.truncf %1 : vector<8x32xf32> to vector<8x32xbf16>
    %c0_2 = arith.constant 0 : index
    %c0_3 = arith.constant 0 : index
    %3 = vector.load %arg2[%c0_2, %c0_3] : memref<32x96xbf16, #tpu.memory_space<vmem>>, vector<32x96xbf16>
    %cst = arith.constant dense<0.000000e+00> : vector<8x96xf32>
    %4 = tpu.matmul %2, %3, %cst {dimension_numbers = #tpu.dot_dimension_numbers<[1], [0], [0], [1], [0, 0, 1, 1], [], []>} : vector<8x32xbf16>, vector<32x96xbf16>, vector<8x96xf32> -> vector<8x96xf32>
    %c0_4 = arith.constant 0 : index
    %c0_5 = arith.constant 0 : index
    %5 = vector.load %arg3[%c0_4, %c0_5] : memref<1x96xf32, #tpu.memory_space<vmem>>, vector<1x96xf32>
    %6 = vector.broadcast %5 : vector<1x96xf32> to vector<8x96xf32>
    %7 = arith.addf %4, %6 : vector<8x96xf32>
    %8 = vector.extract_strided_slice %7 {offsets = [0, 0], sizes = [8, 32], strides = [1, 1]} : vector<8x96xf32> to vector<8x32xf32>
    %cst_6 = arith.constant 0.353553385 : f32
    %9 = vector.broadcast %cst_6 : f32 to vector<8x32xf32>
    %10 = arith.mulf %8, %9 : vector<8x32xf32>
    %11 = arith.truncf %10 : vector<8x32xf32> to vector<8x32xbf16>
    %12 = vector.shape_cast %11 : vector<8x32xbf16> to vector<8x4x8xbf16>
    %13 = tpu.transpose %12, [1, 0, 2] : vector<8x4x8xbf16> -> vector<4x8x8xbf16>
    %14 = vector.extract_strided_slice %7 {offsets = [0, 32], sizes = [8, 32], strides = [1, 1]} : vector<8x96xf32> to vector<8x32xf32>
    %15 = arith.truncf %14 : vector<8x32xf32> to vector<8x32xbf16>
    %16 = vector.shape_cast %15 : vector<8x32xbf16> to vector<8x4x8xbf16>
    %17 = tpu.transpose %16, [1, 0, 2] : vector<8x4x8xbf16> -> vector<4x8x8xbf16>
    %18 = vector.extract_strided_slice %7 {offsets = [0, 64], sizes = [8, 32], strides = [1, 1]} : vector<8x96xf32> to vector<8x32xf32>
    %19 = arith.truncf %18 : vector<8x32xf32> to vector<8x32xbf16>
    %20 = vector.shape_cast %19 : vector<8x32xbf16> to vector<8x4x8xbf16>
    %21 = tpu.transpose %20, [1, 0, 2] : vector<8x4x8xbf16> -> vector<4x8x8xbf16>
    %c0_7 = arith.constant 0 : index
    %c0_8 = arith.constant 0 : index
    %c0_9 = arith.constant 0 : index
    %22 = vector.load %arg6[%c0_7, %c0_8, %c0_9] : memref<1x8x8xf32, #tpu.memory_space<vmem>>, vector<1x8x8xf32>
    %23 = vector.shape_cast %22 : vector<1x8x8xf32> to vector<8x8xf32>
    %c0_10 = arith.constant 0 : index
    %c0_11 = arith.constant 0 : index
    %c0_12 = arith.constant 0 : index
    %24 = vector.load %arg4[%c0_10, %c0_11, %c0_12] : memref<4x8x32xbf16, #tpu.memory_space<vmem>>, vector<4x8x32xbf16>
    %c0_13 = arith.constant 0 : index
    %c0_14 = arith.constant 0 : index
    %25 = vector.load %arg5[%c0_13, %c0_14] : memref<1x32xf32, #tpu.memory_space<vmem>>, vector<1x32xf32>
    "tpu.trace_start"() <{level = 10 : i32, message = "hqd,hkd->hqk"}> : () -> ()
    %cst_15 = arith.constant dense<0.000000e+00> : vector<4x8x8xf32>
    %26 = tpu.matmul %13, %17, %cst_15 {dimension_numbers = #tpu.dot_dimension_numbers<[2], [2], [1], [1], [0, 0, 0, 1, 1, 1], [0], [0]>} : vector<4x8x8xbf16>, vector<4x8x8xbf16>, vector<4x8x8xf32> -> vector<4x8x8xf32>
    %cst_16 = arith.constant 5.000000e-01 : f32
    "tpu.trace_stop"() : () -> ()
    %27 = vector.broadcast %cst_16 : f32 to vector<8x8xf32>
    %28 = arith.cmpf olt, %23, %27 : vector<8x8xf32>
    %cst_17 = arith.constant -1.000000e+09 : f32
    %29 = vector.shape_cast %28 : vector<8x8xi1> to vector<1x8x8xi1>
    %30 = vector.broadcast %29 : vector<1x8x8xi1> to vector<4x8x8xi1>
    %31 = vector.broadcast %cst_17 : f32 to vector<4x8x8xf32>
    %32 = arith.select %30, %31, %26 : vector<4x8x8xi1>, vector<4x8x8xf32>
    %cst_18 = arith.constant dense<0xFF800000> : vector<4x8xf32>
    %33 = vector.multi_reduction <maximumf>, %32, %cst_18 [2] : vector<4x8x8xf32> to vector<4x8xf32>
    %34 = vector.shape_cast %33 : vector<4x8xf32> to vector<4x8x1xf32>
    %35 = vector.broadcast %34 : vector<4x8x1xf32> to vector<4x8x8xf32>
    %36 = arith.subf %32, %35 : vector<4x8x8xf32>
    %37 = math.exp %36 : vector<4x8x8xf32>
    %cst_19 = arith.constant dense<0.000000e+00> : vector<4x8xf32>
    %38 = vector.multi_reduction <add>, %37, %cst_19 [2] : vector<4x8x8xf32> to vector<4x8xf32>
    %39 = vector.shape_cast %38 : vector<4x8xf32> to vector<4x8x1xf32>
    %40 = tpu.reciprocal %39 {approx = true} : vector<4x8x1xf32> -> vector<4x8x1xf32>
    %41 = vector.broadcast %40 : vector<4x8x1xf32> to vector<4x8x8xf32>
    %42 = arith.mulf %37, %41 : vector<4x8x8xf32>
    %43 = arith.truncf %42 : vector<4x8x8xf32> to vector<4x8x8xbf16>
    "tpu.trace_start"() <{level = 10 : i32, message = "hqk,hkd->hqd"}> : () -> ()
    %cst_20 = arith.constant dense<0.000000e+00> : vector<4x8x8xf32>
    %44 = tpu.matmul %43, %21, %cst_20 {dimension_numbers = #tpu.dot_dimension_numbers<[2], [1], [1], [2], [0, 0, 0, 1, 1, 2], [0], [0]>} : vector<4x8x8xbf16>, vector<4x8x8xbf16>, vector<4x8x8xf32> -> vector<4x8x8xf32>
    "tpu.trace_stop"() : () -> ()
    %45 = arith.truncf %44 : vector<4x8x8xf32> to vector<4x8x8xbf16>
    "tpu.trace_start"() <{level = 10 : i32, message = "hqd,hdn->hqn"}> : () -> ()
    %cst_21 = arith.constant dense<0.000000e+00> : vector<4x8x32xf32>
    %46 = tpu.matmul %45, %24, %cst_21 {dimension_numbers = #tpu.dot_dimension_numbers<[2], [1], [1], [2], [0, 0, 0, 1, 1, 2], [0], [0]>} : vector<4x8x8xbf16>, vector<4x8x32xbf16>, vector<4x8x32xf32> -> vector<4x8x32xf32>
    "tpu.trace_stop"() : () -> ()
    %cst_22 = arith.constant dense<0.000000e+00> : vector<8x32xf32>
    %47 = vector.multi_reduction <add>, %46, %cst_22 [0] : vector<4x8x32xf32> to vector<8x32xf32>
    %48 = vector.broadcast %25 : vector<1x32xf32> to vector<8x32xf32>
    %49 = arith.addf %47, %48 : vector<8x32xf32>
    %50 = arith.addf %1, %49 : vector<8x32xf32>
    %c0_23 = arith.constant 0 : index
    %c0_24 = arith.constant 0 : index
    %51 = vector.load %arg7[%c0_23, %c0_24] : memref<1x32xf32, #tpu.memory_space<vmem>>, vector<1x32xf32>
    %c0_25 = arith.constant 0 : index
    %c0_26 = arith.constant 0 : index
    %52 = vector.load %arg8[%c0_25, %c0_26] : memref<1x32xf32, #tpu.memory_space<vmem>>, vector<1x32xf32>
    %cst_27 = arith.constant dense<0.000000e+00> : vector<8xf32>
    %53 = vector.multi_reduction <add>, %50, %cst_27 [1] : vector<8x32xf32> to vector<8xf32>
    %54 = vector.shape_cast %53 : vector<8xf32> to vector<8x1xf32>
    %cst_28 = arith.constant 3.200000e+01 : f32
    %55 = vector.broadcast %cst_28 : f32 to vector<8x1xf32>
    %56 = arith.divf %54, %55 : vector<8x1xf32>
    %57 = vector.broadcast %56 : vector<8x1xf32> to vector<8x32xf32>
    %58 = arith.subf %50, %57 : vector<8x32xf32>
    %59 = arith.mulf %58, %58 : vector<8x32xf32>
    %cst_29 = arith.constant dense<0.000000e+00> : vector<8xf32>
    %60 = vector.multi_reduction <add>, %59, %cst_29 [1] : vector<8x32xf32> to vector<8xf32>
    %61 = vector.shape_cast %60 : vector<8xf32> to vector<8x1xf32>
    %cst_30 = arith.constant 3.100000e+01 : f32
    %62 = vector.broadcast %cst_30 : f32 to vector<8x1xf32>
    %63 = arith.divf %61, %62 : vector<8x1xf32>
    %64 = math.sqrt %63 : vector<8x1xf32>
    %cst_31 = arith.constant 9.99999997E-7 : f32
    %65 = vector.broadcast %cst_31 : f32 to vector<8x1xf32>
    %66 = arith.addf %64, %65 : vector<8x1xf32>
    %67 = tpu.reciprocal %66 {approx = true} : vector<8x1xf32> -> vector<8x1xf32>
    %68 = vector.broadcast %56 : vector<8x1xf32> to vector<8x32xf32>
    %69 = arith.subf %50, %68 : vector<8x32xf32>
    %70 = vector.broadcast %51 : vector<1x32xf32> to vector<8x32xf32>
    %71 = arith.mulf %70, %69 : vector<8x32xf32>
    %72 = vector.broadcast %67 : vector<8x1xf32> to vector<8x32xf32>
    %73 = arith.mulf %71, %72 : vector<8x32xf32>
    %74 = vector.broadcast %52 : vector<1x32xf32> to vector<8x32xf32>
    %75 = arith.addf %73, %74 : vector<8x32xf32>
    %c0_32 = arith.constant 0 : index
    %c0_33 = arith.constant 0 : index
    %c0_34 = arith.constant 0 : index
    %76 = vector.load %arg9[%c0_32, %c0_33, %c0_34] : memref<1x8x32xf32, #tpu.memory_space<vmem>>, vector<1x8x32xf32>
    %77 = vector.shape_cast %76 : vector<1x8x32xf32> to vector<8x32xf32>
    %78 = vector.shape_cast %75 : vector<8x32xf32> to vector<1x8x32xf32>
    tpu.vector_store %arg9[%c0_32, %c0_33, %c0_34], %78 {strides = array<i32>} : memref<1x8x32xf32, #tpu.memory_space<vmem>>, vector<1x8x32xf32>,
    return
  }
  func.func @transform_0(%arg0: i32) -> (i32, i32, i32) {
    %c0_i32 = arith.constant 0 : i32
    %c0_i32_0 = arith.constant 0 : i32
    %c0_i32_1 = arith.constant 0 : i32
    return %arg0, %c0_i32, %c0_i32_0 : i32, i32, i32
  }
  func.func @transform_1(%arg0: i32) -> (i32, i32) {
    %c0_i32 = arith.constant 0 : i32
    %c0_i32_0 = arith.constant 0 : i32
    %c0_i32_1 = arith.constant 0 : i32
    return %c0_i32, %c0_i32_0 : i32, i32
  }
  func.func @transform_2(%arg0: i32) -> (i32, i32) {
    %c0_i32 = arith.constant 0 : i32
    %c0_i32_0 = arith.constant 0 : i32
    %c0_i32_1 = arith.constant 0 : i32
    return %c0_i32, %c0_i32_0 : i32, i32
  }
  func.func @transform_3(%arg0: i32) -> (i32, i32, i32) {
    %c0_i32 = arith.constant 0 : i32
    %c0_i32_0 = arith.constant 0 : i32
    %c0_i32_1 = arith.constant 0 : i32
    %c0_i32_2 = arith.constant 0 : i32
    return %c0_i32, %c0_i32_0, %c0_i32_1 : i32, i32, i32
  }
  func.func @transform_4(%arg0: i32) -> (i32, i32) {
    %c0_i32 = arith.constant 0 : i32
    %c0_i32_0 = arith.constant 0 : i32
    %c0_i32_1 = arith.constant 0 : i32
    return %c0_i32, %c0_i32_0 : i32, i32
  }
  func.func @transform_5(%arg0: i32) -> (i32, i32, i32) {
    %c0_i32 = arith.constant 0 : i32
    %c0_i32_0 = arith.constant 0 : i32
    %c0_i32_1 = arith.constant 0 : i32
    return %arg0, %c0_i32, %c0_i32_0 : i32, i32, i32
  }
  func.func @transform_6(%arg0: i32) -> (i32, i32) {
    %c0_i32 = arith.constant 0 : i32
    %c0_i32_0 = arith.constant 0 : i32
    %c0_i32_1 = arith.constant 0 : i32
    return %c0_i32, %c0_i32_0 : i32, i32
  }
  func.func @transform_7(%arg0: i32) -> (i32, i32) {
    %c0_i32 = arith.constant 0 : i32
    %c0_i32_0 = arith.constant 0 : i32
    %c0_i32_1 = arith.constant 0 : i32
    return %c0_i32, %c0_i32_0 : i32, i32
  }
  func.func @transform_8(%arg0: i32) -> (i32, i32, i32) {
    %c0_i32 = arith.constant 0 : i32
    %c0_i32_0 = arith.constant 0 : i32
    %c0_i32_1 = arith.constant 0 : i32
    return %arg0, %c0_i32, %c0_i32_0 : i32, i32, i32
  }
}

module attributes {stable_mosaic.version = 11 : i64} {
  func.func @_ffn_ln_kernel(%arg0: i32, %arg1: memref<16x32xf32, #tpu.memory_space<vmem>>, %arg2: memref<32x64xbf16, #tpu.memory_space<vmem>>, %arg3: memref<1x64xf32, #tpu.memory_space<vmem>>, %arg4: memref<64x32xbf16, #tpu.memory_space<vmem>>, %arg5: memref<1x32xf32, #tpu.memory_space<vmem>>, %arg6: memref<1x32xf32, #tpu.memory_space<vmem>>, %arg7: memref<1x32xf32, #tpu.memory_space<vmem>>, %arg8: memref<16x32xf32, #tpu.memory_space<vmem>>) attributes {dimension_semantics = [#tpu.dimension_semantics<parallel>], iteration_bounds = array<i64: 1>, scalar_prefetch = 0 : i64, scratch_operands = 0 : i64, tpu.core_type = #tpu.core_type<tc>, window_params = [{transform_indices = @transform_0, window_bounds = array<i64: 16, 32>}, {pipeline_mode = #tpu.pipeline_mode<synchronous>, transform_indices = @transform_1, window_bounds = array<i64: 32, 64>}, {pipeline_mode = #tpu.pipeline_mode<synchronous>, transform_indices = @transform_2, window_bounds = array<i64: 1, 64>}, {pipeline_mode = #tpu.pipeline_mode<synchronous>, transform_indices = @transform_3, window_bounds = array<i64: 64, 32>}, {pipeline_mode = #tpu.pipeline_mode<synchronous>, transform_indices = @transform_4, window_bounds = array<i64: 1, 32>}, {pipeline_mode = #tpu.pipeline_mode<synchronous>, transform_indices = @transform_5, window_bounds = array<i64: 1, 32>}, {pipeline_mode = #tpu.pipeline_mode<synchronous>, transform_indices = @transform_6, window_bounds = array<i64: 1, 32>}, {transform_indices = @transform_7, window_bounds = array<i64: 16, 32>}]} {
    %c0 = arith.constant 0 : index
    %c0_0 = arith.constant 0 : index
    %0 = vector.load %arg1[%c0, %c0_0] : memref<16x32xf32, #tpu.memory_space<vmem>>, vector<16x32xf32>
    %1 = arith.truncf %0 : vector<16x32xf32> to vector<16x32xbf16>
    %c0_1 = arith.constant 0 : index
    %c0_2 = arith.constant 0 : index
    %2 = vector.load %arg2[%c0_1, %c0_2] : memref<32x64xbf16, #tpu.memory_space<vmem>>, vector<32x64xbf16>
    %cst = arith.constant dense<0.000000e+00> : vector<16x64xf32>
    %3 = tpu.matmul %1, %2, %cst {dimension_numbers = #tpu.dot_dimension_numbers<[1], [0], [0], [1], [0, 0, 1, 1], [], []>} : vector<16x32xbf16>, vector<32x64xbf16>, vector<16x64xf32> -> vector<16x64xf32>
    %c0_3 = arith.constant 0 : index
    %c0_4 = arith.constant 0 : index
    %4 = vector.load %arg3[%c0_3, %c0_4] : memref<1x64xf32, #tpu.memory_space<vmem>>, vector<1x64xf32>
    %5 = vector.broadcast %4 : vector<1x64xf32> to vector<16x64xf32>
    %6 = arith.addf %3, %5 : vector<16x64xf32>
    %cst_5 = arith.constant 0.000000e+00 : f32
    %7 = vector.broadcast %cst_5 : f32 to vector<16x64xf32>
    %8 = arith.maximumf %6, %7 : vector<16x64xf32>
    %9 = arith.truncf %8 : vector<16x64xf32> to vector<16x64xbf16>
    %c0_6 = arith.constant 0 : index
    %c0_7 = arith.constant 0 : index
    %10 = vector.load %arg4[%c0_6, %c0_7] : memref<64x32xbf16, #tpu.memory_space<vmem>>, vector<64x32xbf16>
    %cst_8 = arith.constant dense<0.000000e+00> : vector<16x32xf32>
    %11 = tpu.matmul %9, %10, %cst_8 {dimension_numbers = #tpu.dot_dimension_numbers<[1], [0], [0], [1], [0, 0, 1, 1], [], []>} : vector<16x64xbf16>, vector<64x32xbf16>, vector<16x32xf32> -> vector<16x32xf32>
    %c0_9 = arith.constant 0 : index
    %c0_10 = arith.constant 0 : index
    %12 = vector.load %arg5[%c0_9, %c0_10] : memref<1x32xf32, #tpu.memory_space<vmem>>, vector<1x32xf32>
    %13 = vector.broadcast %12 : vector<1x32xf32> to vector<16x32xf32>
    %14 = arith.addf %11, %13 : vector<16x32xf32>
    %15 = arith.addf %0, %14 : vector<16x32xf32>
    %c0_11 = arith.constant 0 : index
    %c0_12 = arith.constant 0 : index
    %16 = vector.load %arg6[%c0_11, %c0_12] : memref<1x32xf32, #tpu.memory_space<vmem>>, vector<1x32xf32>
    %c0_13 = arith.constant 0 : index
    %c0_14 = arith.constant 0 : index
    %17 = vector.load %arg7[%c0_13, %c0_14] : memref<1x32xf32, #tpu.memory_space<vmem>>, vector<1x32xf32>
    %cst_15 = arith.constant dense<0.000000e+00> : vector<16xf32>
    %18 = vector.multi_reduction <add>, %15, %cst_15 [1] : vector<16x32xf32> to vector<16xf32>
    %19 = vector.shape_cast %18 : vector<16xf32> to vector<16x1xf32>
    %cst_16 = arith.constant 3.200000e+01 : f32
    %20 = vector.broadcast %cst_16 : f32 to vector<16x1xf32>
    %21 = arith.divf %19, %20 : vector<16x1xf32>
    %22 = vector.broadcast %21 : vector<16x1xf32> to vector<16x32xf32>
    %23 = arith.subf %15, %22 : vector<16x32xf32>
    %24 = arith.mulf %23, %23 : vector<16x32xf32>
    %cst_17 = arith.constant dense<0.000000e+00> : vector<16xf32>
    %25 = vector.multi_reduction <add>, %24, %cst_17 [1] : vector<16x32xf32> to vector<16xf32>
    %26 = vector.shape_cast %25 : vector<16xf32> to vector<16x1xf32>
    %cst_18 = arith.constant 3.100000e+01 : f32
    %27 = vector.broadcast %cst_18 : f32 to vector<16x1xf32>
    %28 = arith.divf %26, %27 : vector<16x1xf32>
    %29 = math.sqrt %28 : vector<16x1xf32>
    %cst_19 = arith.constant 9.99999997E-7 : f32
    %30 = vector.broadcast %cst_19 : f32 to vector<16x1xf32>
    %31 = arith.addf %29, %30 : vector<16x1xf32>
    %32 = tpu.reciprocal %31 {approx = true} : vector<16x1xf32> -> vector<16x1xf32>
    %33 = vector.broadcast %21 : vector<16x1xf32> to vector<16x32xf32>
    %34 = arith.subf %15, %33 : vector<16x32xf32>
    %35 = vector.broadcast %16 : vector<1x32xf32> to vector<16x32xf32>
    %36 = arith.mulf %35, %34 : vector<16x32xf32>
    %37 = vector.broadcast %32 : vector<16x1xf32> to vector<16x32xf32>
    %38 = arith.mulf %36, %37 : vector<16x32xf32>
    %39 = vector.broadcast %17 : vector<1x32xf32> to vector<16x32xf32>
    %40 = arith.addf %38, %39 : vector<16x32xf32>
    %c0_20 = arith.constant 0 : index
    %c0_21 = arith.constant 0 : index
    %41 = vector.load %arg8[%c0_20, %c0_21] : memref<16x32xf32, #tpu.memory_space<vmem>>, vector<16x32xf32>
    tpu.vector_store %arg8[%c0_20, %c0_21], %40 {strides = array<i32>} : memref<16x32xf32, #tpu.memory_space<vmem>>, vector<16x32xf32>,
    return
  }
  func.func @transform_0(%arg0: i32) -> (i32, i32) {
    %c0_i32 = arith.constant 0 : i32
    %c0_i32_0 = arith.constant 0 : i32
    return %arg0, %c0_i32 : i32, i32
  }
  func.func @transform_1(%arg0: i32) -> (i32, i32) {
    %c0_i32 = arith.constant 0 : i32
    %c0_i32_0 = arith.constant 0 : i32
    %c0_i32_1 = arith.constant 0 : i32
    return %c0_i32, %c0_i32_0 : i32, i32
  }
  func.func @transform_2(%arg0: i32) -> (i32, i32) {
    %c0_i32 = arith.constant 0 : i32
    %c0_i32_0 = arith.constant 0 : i32
    %c0_i32_1 = arith.constant 0 : i32
    return %c0_i32, %c0_i32_0 : i32, i32
  }
  func.func @transform_3(%arg0: i32) -> (i32, i32) {
    %c0_i32 = arith.constant 0 : i32
    %c0_i32_0 = arith.constant 0 : i32
    %c0_i32_1 = arith.constant 0 : i32
    return %c0_i32, %c0_i32_0 : i32, i32
  }
  func.func @transform_4(%arg0: i32) -> (i32, i32) {
    %c0_i32 = arith.constant 0 : i32
    %c0_i32_0 = arith.constant 0 : i32
    %c0_i32_1 = arith.constant 0 : i32
    return %c0_i32, %c0_i32_0 : i32, i32
  }
  func.func @transform_5(%arg0: i32) -> (i32, i32) {
    %c0_i32 = arith.constant 0 : i32
    %c0_i32_0 = arith.constant 0 : i32
    %c0_i32_1 = arith.constant 0 : i32
    return %c0_i32, %c0_i32_0 : i32, i32
  }
  func.func @transform_6(%arg0: i32) -> (i32, i32) {
    %c0_i32 = arith.constant 0 : i32
    %c0_i32_0 = arith.constant 0 : i32
    %c0_i32_1 = arith.constant 0 : i32
    return %c0_i32, %c0_i32_0 : i32, i32
  }
  func.func @transform_7(%arg0: i32) -> (i32, i32) {
    %c0_i32 = arith.constant 0 : i32
    %c0_i32_0 = arith.constant 0 : i32
    return %arg0, %c0_i32 : i32, i32
  }
}

module attributes {stable_mosaic.version = 11 : i64} {
  func.func @_cross_attn_ln_kernel(%arg0: i32, %arg1: memref<1x8x32xf32, #tpu.memory_space<vmem>>, %arg2: memref<1x8x32xf32, #tpu.memory_space<vmem>>, %arg3: memref<32x32xbf16, #tpu.memory_space<vmem>>, %arg4: memref<1x32xf32, #tpu.memory_space<vmem>>, %arg5: memref<32x64xbf16, #tpu.memory_space<vmem>>, %arg6: memref<1x64xf32, #tpu.memory_space<vmem>>, %arg7: memref<4x8x32xbf16, #tpu.memory_space<vmem>>, %arg8: memref<1x32xf32, #tpu.memory_space<vmem>>, %arg9: memref<1x1x8xf32, #tpu.memory_space<vmem>>, %arg10: memref<1x32xf32, #tpu.memory_space<vmem>>, %arg11: memref<1x32xf32, #tpu.memory_space<vmem>>, %arg12: memref<1x8x32xf32, #tpu.memory_space<vmem>>) attributes {dimension_semantics = [#tpu.dimension_semantics<parallel>], iteration_bounds = array<i64: 2>, scalar_prefetch = 0 : i64, scratch_operands = 0 : i64, tpu.core_type = #tpu.core_type<tc>, window_params = [{transform_indices = @transform_0, window_bounds = array<i64: 1, 8, 32>}, {transform_indices = @transform_1, window_bounds = array<i64: 1, 8, 32>}, {pipeline_mode = #tpu.pipeline_mode<synchronous>, transform_indices = @transform_2, window_bounds = array<i64: 32, 32>}, {pipeline_mode = #tpu.pipeline_mode<synchronous>, transform_indices = @transform_3, window_bounds = array<i64: 1, 32>}, {pipeline_mode = #tpu.pipeline_mode<synchronous>, transform_indices = @transform_4, window_bounds = array<i64: 32, 64>}, {pipeline_mode = #tpu.pipeline_mode<synchronous>, transform_indices = @transform_5, window_bounds = array<i64: 1, 64>}, {pipeline_mode = #tpu.pipeline_mode<synchronous>, transform_indices = @transform_6, window_bounds = array<i64: 4, 8, 32>}, {pipeline_mode = #tpu.pipeline_mode<synchronous>, transform_indices = @transform_7, window_bounds = array<i64: 1, 32>}, {transform_indices = @transform_8, window_bounds = array<i64: 1, 1, 8>}, {pipeline_mode = #tpu.pipeline_mode<synchronous>, transform_indices = @transform_9, window_bounds = array<i64: 1, 32>}, {pipeline_mode = #tpu.pipeline_mode<synchronous>, transform_indices = @transform_10, window_bounds = array<i64: 1, 32>}, {transform_indices = @transform_11, window_bounds = array<i64: 1, 8, 32>}]} {
    %c0 = arith.constant 0 : index
    %c0_0 = arith.constant 0 : index
    %c0_1 = arith.constant 0 : index
    %0 = vector.load %arg1[%c0, %c0_0, %c0_1] : memref<1x8x32xf32, #tpu.memory_space<vmem>>, vector<1x8x32xf32>
    %1 = vector.shape_cast %0 : vector<1x8x32xf32> to vector<8x32xf32>
    %c0_2 = arith.constant 0 : index
    %c0_3 = arith.constant 0 : index
    %c0_4 = arith.constant 0 : index
    %2 = vector.load %arg2[%c0_2, %c0_3, %c0_4] : memref<1x8x32xf32, #tpu.memory_space<vmem>>, vector<1x8x32xf32>
    %3 = vector.shape_cast %2 : vector<1x8x32xf32> to vector<8x32xf32>
    %4 = arith.truncf %1 : vector<8x32xf32> to vector<8x32xbf16>
    %c0_5 = arith.constant 0 : index
    %c0_6 = arith.constant 0 : index
    %5 = vector.load %arg3[%c0_5, %c0_6] : memref<32x32xbf16, #tpu.memory_space<vmem>>, vector<32x32xbf16>
    %cst = arith.constant dense<0.000000e+00> : vector<8x32xf32>
    %6 = tpu.matmul %4, %5, %cst {dimension_numbers = #tpu.dot_dimension_numbers<[1], [0], [0], [1], [0, 0, 1, 1], [], []>} : vector<8x32xbf16>, vector<32x32xbf16>, vector<8x32xf32> -> vector<8x32xf32>
    %c0_7 = arith.constant 0 : index
    %c0_8 = arith.constant 0 : index
    %7 = vector.load %arg4[%c0_7, %c0_8] : memref<1x32xf32, #tpu.memory_space<vmem>>, vector<1x32xf32>
    %8 = vector.broadcast %7 : vector<1x32xf32> to vector<8x32xf32>
    %9 = arith.addf %6, %8 : vector<8x32xf32>
    %10 = arith.truncf %3 : vector<8x32xf32> to vector<8x32xbf16>
    %c0_9 = arith.constant 0 : index
    %c0_10 = arith.constant 0 : index
    %11 = vector.load %arg5[%c0_9, %c0_10] : memref<32x64xbf16, #tpu.memory_space<vmem>>, vector<32x64xbf16>
    %cst_11 = arith.constant dense<0.000000e+00> : vector<8x64xf32>
    %12 = tpu.matmul %10, %11, %cst_11 {dimension_numbers = #tpu.dot_dimension_numbers<[1], [0], [0], [1], [0, 0, 1, 1], [], []>} : vector<8x32xbf16>, vector<32x64xbf16>, vector<8x64xf32> -> vector<8x64xf32>
    %c0_12 = arith.constant 0 : index
    %c0_13 = arith.constant 0 : index
    %13 = vector.load %arg6[%c0_12, %c0_13] : memref<1x64xf32, #tpu.memory_space<vmem>>, vector<1x64xf32>
    %14 = vector.broadcast %13 : vector<1x64xf32> to vector<8x64xf32>
    %15 = arith.addf %12, %14 : vector<8x64xf32>
    %cst_14 = arith.constant 0.353553385 : f32
    %16 = vector.broadcast %cst_14 : f32 to vector<8x32xf32>
    %17 = arith.mulf %9, %16 : vector<8x32xf32>
    %18 = arith.truncf %17 : vector<8x32xf32> to vector<8x32xbf16>
    %19 = vector.shape_cast %18 : vector<8x32xbf16> to vector<8x4x8xbf16>
    %20 = tpu.transpose %19, [1, 0, 2] : vector<8x4x8xbf16> -> vector<4x8x8xbf16>
    %21 = vector.extract_strided_slice %15 {offsets = [0, 0], sizes = [8, 32], strides = [1, 1]} : vector<8x64xf32> to vector<8x32xf32>
    %22 = arith.truncf %21 : vector<8x32xf32> to vector<8x32xbf16>
    %23 = vector.shape_cast %22 : vector<8x32xbf16> to vector<8x4x8xbf16>
    %24 = tpu.transpose %23, [1, 0, 2] : vector<8x4x8xbf16> -> vector<4x8x8xbf16>
    %25 = vector.extract_strided_slice %15 {offsets = [0, 32], sizes = [8, 32], strides = [1, 1]} : vector<8x64xf32> to vector<8x32xf32>
    %26 = arith.truncf %25 : vector<8x32xf32> to vector<8x32xbf16>
    %27 = vector.shape_cast %26 : vector<8x32xbf16> to vector<8x4x8xbf16>
    %28 = tpu.transpose %27, [1, 0, 2] : vector<8x4x8xbf16> -> vector<4x8x8xbf16>
    %c0_15 = arith.constant 0 : index
    %c0_16 = arith.constant 0 : index
    %c0_17 = arith.constant 0 : index
    %29 = vector.load %arg9[%c0_15, %c0_16, %c0_17] : memref<1x1x8xf32, #tpu.memory_space<vmem>>, vector<1x1x8xf32>
    %30 = vector.shape_cast %29 : vector<1x1x8xf32> to vector<1x8xf32>
    %c0_18 = arith.constant 0 : index
    %c0_19 = arith.constant 0 : index
    %c0_20 = arith.constant 0 : index
    %31 = vector.load %arg7[%c0_18, %c0_19, %c0_20] : memref<4x8x32xbf16, #tpu.memory_space<vmem>>, vector<4x8x32xbf16>
    %c0_21 = arith.constant 0 : index
    %c0_22 = arith.constant 0 : index
    %32 = vector.load %arg8[%c0_21, %c0_22] : memref<1x32xf32, #tpu.memory_space<vmem>>, vector<1x32xf32>
    "tpu.trace_start"() <{level = 10 : i32, message = "hqd,hkd->hqk"}> : () -> ()
    %cst_23 = arith.constant dense<0.000000e+00> : vector<4x8x8xf32>
    %33 = tpu.matmul %20, %24, %cst_23 {dimension_numbers = #tpu.dot_dimension_numbers<[2], [2], [1], [1], [0, 0, 0, 1, 1, 1], [0], [0]>} : vector<4x8x8xbf16>, vector<4x8x8xbf16>, vector<4x8x8xf32> -> vector<4x8x8xf32>
    %cst_24 = arith.constant 5.000000e-01 : f32
    "tpu.trace_stop"() : () -> ()
    %34 = vector.broadcast %cst_24 : f32 to vector<1x8xf32>
    %35 = arith.cmpf olt, %30, %34 : vector<1x8xf32>
    %cst_25 = arith.constant -1.000000e+09 : f32
    %36 = vector.shape_cast %35 : vector<1x8xi1> to vector<1x1x8xi1>
    %37 = vector.broadcast %36 : vector<1x1x8xi1> to vector<4x8x8xi1>
    %38 = vector.broadcast %cst_25 : f32 to vector<4x8x8xf32>
    %39 = arith.select %37, %38, %33 : vector<4x8x8xi1>, vector<4x8x8xf32>
    %cst_26 = arith.constant dense<0xFF800000> : vector<4x8xf32>
    %40 = vector.multi_reduction <maximumf>, %39, %cst_26 [2] : vector<4x8x8xf32> to vector<4x8xf32>
    %41 = vector.shape_cast %40 : vector<4x8xf32> to vector<4x8x1xf32>
    %42 = vector.broadcast %41 : vector<4x8x1xf32> to vector<4x8x8xf32>
    %43 = arith.subf %39, %42 : vector<4x8x8xf32>
    %44 = math.exp %43 : vector<4x8x8xf32>
    %cst_27 = arith.constant dense<0.000000e+00> : vector<4x8xf32>
    %45 = vector.multi_reduction <add>, %44, %cst_27 [2] : vector<4x8x8xf32> to vector<4x8xf32>
    %46 = vector.shape_cast %45 : vector<4x8xf32> to vector<4x8x1xf32>
    %47 = tpu.reciprocal %46 {approx = true} : vector<4x8x1xf32> -> vector<4x8x1xf32>
    %48 = vector.broadcast %47 : vector<4x8x1xf32> to vector<4x8x8xf32>
    %49 = arith.mulf %44, %48 : vector<4x8x8xf32>
    %50 = arith.truncf %49 : vector<4x8x8xf32> to vector<4x8x8xbf16>
    "tpu.trace_start"() <{level = 10 : i32, message = "hqk,hkd->hqd"}> : () -> ()
    %cst_28 = arith.constant dense<0.000000e+00> : vector<4x8x8xf32>
    %51 = tpu.matmul %50, %28, %cst_28 {dimension_numbers = #tpu.dot_dimension_numbers<[2], [1], [1], [2], [0, 0, 0, 1, 1, 2], [0], [0]>} : vector<4x8x8xbf16>, vector<4x8x8xbf16>, vector<4x8x8xf32> -> vector<4x8x8xf32>
    "tpu.trace_stop"() : () -> ()
    %52 = arith.truncf %51 : vector<4x8x8xf32> to vector<4x8x8xbf16>
    "tpu.trace_start"() <{level = 10 : i32, message = "hqd,hdn->hqn"}> : () -> ()
    %cst_29 = arith.constant dense<0.000000e+00> : vector<4x8x32xf32>
    %53 = tpu.matmul %52, %31, %cst_29 {dimension_numbers = #tpu.dot_dimension_numbers<[2], [1], [1], [2], [0, 0, 0, 1, 1, 2], [0], [0]>} : vector<4x8x8xbf16>, vector<4x8x32xbf16>, vector<4x8x32xf32> -> vector<4x8x32xf32>
    "tpu.trace_stop"() : () -> ()
    %cst_30 = arith.constant dense<0.000000e+00> : vector<8x32xf32>
    %54 = vector.multi_reduction <add>, %53, %cst_30 [0] : vector<4x8x32xf32> to vector<8x32xf32>
    %55 = vector.broadcast %32 : vector<1x32xf32> to vector<8x32xf32>
    %56 = arith.addf %54, %55 : vector<8x32xf32>
    %57 = arith.addf %1, %56 : vector<8x32xf32>
    %c0_31 = arith.constant 0 : index
    %c0_32 = arith.constant 0 : index
    %58 = vector.load %arg10[%c0_31, %c0_32] : memref<1x32xf32, #tpu.memory_space<vmem>>, vector<1x32xf32>
    %c0_33 = arith.constant 0 : index
    %c0_34 = arith.constant 0 : index
    %59 = vector.load %arg11[%c0_33, %c0_34] : memref<1x32xf32, #tpu.memory_space<vmem>>, vector<1x32xf32>
    %cst_35 = arith.constant dense<0.000000e+00> : vector<8xf32>
    %60 = vector.multi_reduction <add>, %57, %cst_35 [1] : vector<8x32xf32> to vector<8xf32>
    %61 = vector.shape_cast %60 : vector<8xf32> to vector<8x1xf32>
    %cst_36 = arith.constant 3.200000e+01 : f32
    %62 = vector.broadcast %cst_36 : f32 to vector<8x1xf32>
    %63 = arith.divf %61, %62 : vector<8x1xf32>
    %64 = vector.broadcast %63 : vector<8x1xf32> to vector<8x32xf32>
    %65 = arith.subf %57, %64 : vector<8x32xf32>
    %66 = arith.mulf %65, %65 : vector<8x32xf32>
    %cst_37 = arith.constant dense<0.000000e+00> : vector<8xf32>
    %67 = vector.multi_reduction <add>, %66, %cst_37 [1] : vector<8x32xf32> to vector<8xf32>
    %68 = vector.shape_cast %67 : vector<8xf32> to vector<8x1xf32>
    %cst_38 = arith.constant 3.100000e+01 : f32
    %69 = vector.broadcast %cst_38 : f32 to vector<8x1xf32>
    %70 = arith.divf %68, %69 : vector<8x1xf32>
    %71 = math.sqrt %70 : vector<8x1xf32>
    %cst_39 = arith.constant 9.99999997E-7 : f32
    %72 = vector.broadcast %cst_39 : f32 to vector<8x1xf32>
    %73 = arith.addf %71, %72 : vector<8x1xf32>
    %74 = tpu.reciprocal %73 {approx = true} : vector<8x1xf32> -> vector<8x1xf32>
    %75 = vector.broadcast %63 : vector<8x1xf32> to vector<8x32xf32>
    %76 = arith.subf %57, %75 : vector<8x32xf32>
    %77 = vector.broadcast %58 : vector<1x32xf32> to vector<8x32xf32>
    %78 = arith.mulf %77, %76 : vector<8x32xf32>
    %79 = vector.broadcast %74 : vector<8x1xf32> to vector<8x32xf32>
    %80 = arith.mulf %78, %79 : vector<8x32xf32>
    %81 = vector.broadcast %59 : vector<1x32xf32> to vector<8x32xf32>
    %82 = arith.addf %80, %81 : vector<8x32xf32>
    %c0_40 = arith.constant 0 : index
    %c0_41 = arith.constant 0 : index
    %c0_42 = arith.constant 0 : index
    %83 = vector.load %arg12[%c0_40, %c0_41, %c0_42] : memref<1x8x32xf32, #tpu.memory_space<vmem>>, vector<1x8x32xf32>
    %84 = vector.shape_cast %83 : vector<1x8x32xf32> to vector<8x32xf32>
    %85 = vector.shape_cast %82 : vector<8x32xf32> to vector<1x8x32xf32>
    tpu.vector_store %arg12[%c0_40, %c0_41, %c0_42], %85 {strides = array<i32>} : memref<1x8x32xf32, #tpu.memory_space<vmem>>, vector<1x8x32xf32>,
    return
  }
  func.func @transform_0(%arg0: i32) -> (i32, i32, i32) {
    %c0_i32 = arith.constant 0 : i32
    %c0_i32_0 = arith.constant 0 : i32
    %c0_i32_1 = arith.constant 0 : i32
    return %arg0, %c0_i32, %c0_i32_0 : i32, i32, i32
  }
  func.func @transform_1(%arg0: i32) -> (i32, i32, i32) {
    %c0_i32 = arith.constant 0 : i32
    %c0_i32_0 = arith.constant 0 : i32
    %c0_i32_1 = arith.constant 0 : i32
    return %arg0, %c0_i32, %c0_i32_0 : i32, i32, i32
  }
  func.func @transform_2(%arg0: i32) -> (i32, i32) {
    %c0_i32 = arith.constant 0 : i32
    %c0_i32_0 = arith.constant 0 : i32
    %c0_i32_1 = arith.constant 0 : i32
    return %c0_i32, %c0_i32_0 : i32, i32
  }
  func.func @transform_3(%arg0: i32) -> (i32, i32) {
    %c0_i32 = arith.constant 0 : i32
    %c0_i32_0 = arith.constant 0 : i32
    %c0_i32_1 = arith.constant 0 : i32
    return %c0_i32, %c0_i32_0 : i32, i32
  }
  func.func @transform_4(%arg0: i32) -> (i32, i32) {
    %c0_i32 = arith.constant 0 : i32
    %c0_i32_0 = arith.constant 0 : i32
    %c0_i32_1 = arith.constant 0 : i32
    return %c0_i32, %c0_i32_0 : i32, i32
  }
  func.func @transform_5(%arg0: i32) -> (i32, i32) {
    %c0_i32 = arith.constant 0 : i32
    %c0_i32_0 = arith.constant 0 : i32
    %c0_i32_1 = arith.constant 0 : i32
    return %c0_i32, %c0_i32_0 : i32, i32
  }
  func.func @transform_6(%arg0: i32) -> (i32, i32, i32) {
    %c0_i32 = arith.constant 0 : i32
    %c0_i32_0 = arith.constant 0 : i32
    %c0_i32_1 = arith.constant 0 : i32
    %c0_i32_2 = arith.constant 0 : i32
    return %c0_i32, %c0_i32_0, %c0_i32_1 : i32, i32, i32
  }
  func.func @transform_7(%arg0: i32) -> (i32, i32) {
    %c0_i32 = arith.constant 0 : i32
    %c0_i32_0 = arith.constant 0 : i32
    %c0_i32_1 = arith.constant 0 : i32
    return %c0_i32, %c0_i32_0 : i32, i32
  }
  func.func @transform_8(%arg0: i32) -> (i32, i32, i32) {
    %c0_i32 = arith.constant 0 : i32
    %c0_i32_0 = arith.constant 0 : i32
    %c0_i32_1 = arith.constant 0 : i32
    return %arg0, %c0_i32, %c0_i32_0 : i32, i32, i32
  }
  func.func @transform_9(%arg0: i32) -> (i32, i32) {
    %c0_i32 = arith.constant 0 : i32
    %c0_i32_0 = arith.constant 0 : i32
    %c0_i32_1 = arith.constant 0 : i32
    return %c0_i32, %c0_i32_0 : i32, i32
  }
  func.func @transform_10(%arg0: i32) -> (i32, i32) {
    %c0_i32 = arith.constant 0 : i32
    %c0_i32_0 = arith.constant 0 : i32
    %c0_i32_1 = arith.constant 0 : i32
    return %c0_i32, %c0_i32_0 : i32, i32
  }
  func.func @transform_11(%arg0: i32) -> (i32, i32, i32) {
    %c0_i32 = arith.constant 0 : i32
    %c0_i32_0 = arith.constant 0 : i32
    %c0_i32_1 = arith.constant 0 : i32
    return %arg0, %c0_i32, %c0_i32_0 : i32, i32, i32
  }
}

</mosaic_0001>

<bundles_post_ra>
// kernel: decoder_layer.5
= control target key start
LH: loop header
LB: loop body
LE: loop exit
PB: predicated region body
PF: predicated region fallthrough
CT: control target
= control target key end

     0   :  { %v347_v1 = vmov 0.0   ;;  %vm348_vm0 = vmmov 0   ;;  %vm54_vm1 = vcmask 261120   ;;  %s438_s0 = inlined_call_operand.vmem [shape: f32[16,32], index: 0, kind: input, shape index: {}]   ;;  %s439_s1 = inlined_call_operand.vmem [shape: bf16[32,64], index: 1, kind: input, shape index: {}]   ;;  %s440_s2 = inlined_call_operand.vmem [shape: f32[1,64], index: 2, kind: input, shape index: {}]   ;;  %s441_s3 = inlined_call_operand.vmem [shape: bf16[64,32], index: 3, kind: input, shape index: {}]   ;;  %s442_s4 = inlined_call_operand.vmem [shape: f32[1,32], index: 4, kind: input, shape index: {}]   ;;  %s443_s5 = inlined_call_operand.vmem [shape: f32[1,32], index: 5, kind: input, shape index: {}]   ;;  %s444_s6 = inlined_call_operand.vmem [shape: f32[1,32], index: 6, kind: input, shape index: {}]   ;;  %s445_s7 = inlined_call_operand.hbm [shape: f32[16,32], index: 7, kind: output, shape index: {}]  }
   0x1   :  { %v311_v0 = vld [vmem:[%s439_s1 + $0x8] sm:$0xff]   ;;  %286 = vmatprep.subr.bf16.mxu0 %v347_v1  ;;  %v312_v2 = vld [vmem:[%s439_s1] sm:$0xff]   ;;  %294 = vmatprep.subr.bf16.mxu1 %v347_v1  ;;  %v313_v5 = vld [vmem:[%s441_s3 + $0x18] sm:$0xff]  }
   0x2   :  { %287 = vmatpush3.bf16.msra.mxu0 %v311_v0  ;;  %290 = vmatprep.mubr.msk.bf16.mxu0 %vm348_vm0, %v347_v1  ;;  %v28_v3 = vld [vmem:[%s438_s0] sm:$0xff]  ;;  %v29_v4 = vld [vmem:[%s438_s0 + $0x8] sm:$0xff] }
   0x3   :  { %288 = vmatprep.subr.bf16.mxu0 %v347_v1  ;;  %302 = vmatprep.mubr.msk.bf16.mxu1 %vm348_vm0, %v347_v1  ;;  %v30_v6 = vpack.c.bf16 %v29_v4, %v28_v3 }
   0x4   :  { %295 = vmatpush3.bf16.msra.mxu1 %v313_v5 }
   0x5   :  { %296 = vmatprep.subr.bf16.mxu1 %v347_v1 }
   0x6   :  { %289 = vmatpush3.bf16.msra.mxu0 %v312_v2 }
   0x7   :  { %12 = vsyncpa [#allocation3], 0  ;;  %v314_v7 = vld [vmem:[%s441_s3 + $0x10] sm:$0xff]   ;;  %v315_v8 = vld [vmem:[%s441_s3 + $0x8] sm:$0xff]   ;;  %vm141_vm2 = vcmask 523264   ;;  %s349_s20 = smov [#allocation2]  }
   0x8   :  { %297 = vmatpush3.bf16.msra.mxu1 %v314_v7  ;;  %v316_v9 = vld [vmem:[%s441_s3] sm:$0xff]   ;;  %s255_s21 = sshll.u32 %s349_s20, 4  ;;  %s256_s21 = int_to_ptr.vmem [resolvable:$true] %s255_s21 }
   0x9   :  { %291 = vmatmul.mubr.msk.bf16.vlgmr.msra.gmra.mxu0 %vm54_vm1, %v30_v6  ;;  %298 = vmatprep.subr.bf16.mxu1 %v347_v1  ;;  %v266_v10 = vld [vmem:[%s440_s2] ss:$0 sm:$0xff]  ;;  %p330_p1 = scmp.lt.s32.totalorder %s256_s21, %s256_s21 }
   0xa   :  { %v270_v20 = vld [vmem:[%s442_s4] ss:$0 sm:$0xff] }
   0xb   :  { %v276_v57 = vld [vmem:[%s443_s5] ss:$0 sm:$0xff]  ;;  %s325_s5 = scalar_lea.vmem %s256_s21, 256 }
   0xc   :  { %299 = vmatpush3.bf16.msra.mxu1 %v315_v8  ;;  %v277_v60 = vld [vmem:[%s444_s6] ss:$0 sm:$0xff]  ;;  %p326_p0 = scmp.ne.s32.totalorder %s256_s21, %s325_s5  ;;  %p331_p2 = scmp.lt.s32.totalorder %s325_s5, %s325_s5 }
   0xd   :  { %300 = vmatprep.subr.bf16.mxu1 %v347_v1 }
   0xe   :  { %p332_p3 = por %p331_p2, %p330_p1 }
  0x10   :  { %301 = vmatpush3.bf16.msra.mxu1 %v316_v9  ;;  %p333_p4 = pnand %p332_p3, %p326_p0 }
  0xc9   :  { %v92_v11 = vpop.f32.mrf.mxu0 }
  0xca   :  { %v93_v13 = vadd.f32 %v266_v10, %v92_v11 }
  0xcb   :  { %v292_v12 = vpop.f32.mrf.mxu0 }
  0xcc   :  { %v99_v17 = vmax.f32 %v93_v13, 0.0 }
  0xcd   :  { %v95_v14 = vpop.f32.mrf.mxu0 }
  0xce   :  { %v96_v15 = vadd.f32 %v266_v10, %v95_v14 }
  0xcf   :  { %v293_v16 = vpop.f32.mrf.mxu0 }
  0xd0   :  { %v100_v18 = vmax.f32 %v96_v15, 0.0 }
  0xd2   :  { %v101_v19 = vpack.c.bf16 %v100_v18, %v99_v17 }
  0xd4   :  { %303 = vmatmul.mubr.msk.bf16.vlgmr.msra.gmra.mxu1 %vm141_vm2, %v101_v19 }
 0x194   :  { %v179_v21 = vpop.f32.mrf.mxu1 }
 0x195   :  { %v180_v22 = vadd.f32 %v270_v20, %v179_v21 }
 0x196   :  { %v304_v23 = vpop.f32.mrf.mxu1 }
 0x197   :  { %v186_v24 = vadd.f32 %v180_v22, %v28_v3 }
 0x198   :  { %v182_v25 = vpop.f32.mrf.mxu1 }
 0x199   :  { %v183_v26 = vadd.f32 %v270_v20, %v182_v25  ;;  %v190_v27 = vsel %vm54_vm1, %v186_v24, 0.0 }
 0x19a   :  { %191 = vadd.xlane.f32.xlu0 %v190_v27  ;;  %v305_v28 = vpop.f32.mrf.mxu1 }
 0x19b   :  { %v187_v29 = vadd.f32 %v183_v26, %v29_v4 }
 0x19d   :  { %v193_v30 = vsel %vm54_vm1, %v187_v29, 0.0 }
 0x19e   :  { %194 = vadd.xlane.f32.xlu0 %v193_v30 }
 0x223   :  { %v192_v31 = vpop.xlane.xlu0 %191 }
 0x224   :  { %v197_v32 = vmul.f32 0.03125, %v192_v31 }
 0x226   :  { %v199_v33 = vsub.f32 %v186_v24, %v197_v32 }
 0x227   :  { %v195_v34 = vpop.xlane.xlu0 %194 }
 0x228   :  { %v198_v35 = vmul.f32 0.03125, %v195_v34  ;;  %v201_v36 = vmul.f32 %v199_v33, %v199_v33  ;;  %v236_v58 = vmul.f32 %v276_v57, %v199_v33 }
 0x22a   :  { %v200_v37 = vsub.f32 %v187_v29, %v198_v35  ;;  %v203_v38 = vsel %vm54_vm1, %v201_v36, 0.0 }
 0x22b   :  { %204 = vadd.xlane.f32.xlu1 %v203_v38 }
 0x22c   :  { %v202_v39 = vmul.f32 %v200_v37, %v200_v37  ;;  %v237_v62 = vmul.f32 %v276_v57, %v200_v37 }
 0x22e   :  { %v206_v40 = vsel %vm54_vm1, %v202_v39, 0.0 }
 0x22f   :  { %207 = vadd.xlane.f32.xlu1 %v206_v40 }
 0x2b4   :  { %v205_v41 = vpop.xlane.xlu1 %204 }
 0x2b5   :  { %v210_v42 = vmul.f32 0.032258064, %v205_v41 }
 0x2b7   :  { %317 = vrsqrt.f32 %v210_v42  ;;  %vm214_vm3 = vcmp.eq.f32.partialorder %v210_v42, inf  ;;  %v217_v47 = vand.u32 2147483648, %v210_v42  ;;  %vm216_vm4 = vcmp.eq.f32.partialorder %v210_v42, 0.0 }
 0x2b8   :  { %v208_v43 = vpop.xlane.xlu1 %207 }
 0x2b9   :  { %v211_v44 = vmul.f32 0.032258064, %v208_v43 }
 0x2bb   :  { %319 = vrsqrt.f32 %v211_v44  ;;  %vm221_vm5 = vcmp.eq.f32.partialorder %v211_v44, inf  ;;  %v224_v53 = vand.u32 2147483648, %v211_v44  ;;  %vm223_vm6 = vcmp.eq.f32.partialorder %v211_v44, 0.0 }
 0x2c4   :  { %v318_v45 = vpop.eup %317 }
 0x2c5   :  { %v213_v46 = vmul.f32 %v318_v45, %v210_v42 }
 0x2c7   :  { %v215_v48 = vsel %vm214_vm3, %v210_v42, %v213_v46 }
 0x2c8   :  { %v320_v49 = vpop.eup %319  ;;  %v218_v50 = vsel %vm216_vm4, %v217_v47, %v215_v48 }
 0x2c9   :  { %v226_v51 = vadd.f32 1e-06, %v218_v50  ;;  %v220_v52 = vmul.f32 %v320_v49, %v211_v44 }
 0x2cb   :  { %321 = vrcp.f32 %v226_v51  ;;  %v222_v54 = vsel %vm221_vm5, %v211_v44, %v220_v52 }
 0x2cc   :  { %v225_v55 = vsel %vm223_vm6, %v224_v53, %v222_v54 }
 0x2cd   :  { %v227_v56 = vadd.f32 1e-06, %v225_v55 }
 0x2cf   :  { %323 = vrcp.f32 %v227_v56 }
 0x2d8   :  { %v322_v59 = vpop.eup %321 }
 0x2d9   :  { %v238_v61 = vmul.f32 %v322_v59, %v236_v58 }
 0x2db   :  { %v246_v63 = vadd.f32 %v277_v60, %v238_v61 }
 0x2dc   :  { %v324_v0 = vpop.eup %323 }
 0x2dd   :  { %v239_v1 = vmul.f32 %v324_v0, %v237_v62  ;;  %248 = vst.msk [vmem:[#allocation2] sm:$0xff] %vm54_vm1, %v246_v63 }
 0x2df   :  { %v247_v2 = vadd.f32 %v277_v60, %v239_v1 }
 0x2e1   :  { %249 = vst.msk [vmem:[#allocation2 + $0x8] sm:$0xff] %vm54_vm1, %v247_v2 }
 0x2e2   :  { %336 = shalt.err (!%p333_p4)
}
 0x2e3   :  { %s350_s6 = smov 128   ;;  %s351_s22 = smov 8  }
 0x2e4   :  { %261 = dma.vmem_to_hbm [thread:$0]  %s256_s21, 256, %s445_s7, [#allocation3], %s350_s6, %s350_s6, %s351_s22  }
 0x2e5   :  { %345 = dma.done.wait [#allocation3], 256  }
 0x2e6   :  { %346 = vsyncadd [#allocation3], 4294967040 }
 0x2e7   :  { %265 = vsyncpa [#allocation3], 1 }

// kernel: decoder_layer.4
= control target key start
LH: loop header
LB: loop body
LE: loop exit
PB: predicated region body
PF: predicated region fallthrough
CT: control target
= control target key end

     0   :  { %s2080_s17 = smov 0   ;;  %s2350_s0 = inlined_call_operand.vmem [shape: f32[2,8,32], index: 0, kind: input, shape index: {}]   ;;  %s2351_s1 = inlined_call_operand.vmem [shape: f32[2,8,32], index: 1, kind: input, shape index: {}]   ;;  %s2352_s2 = inlined_call_operand.vmem [shape: bf16[32,32], index: 2, kind: input, shape index: {}]   ;;  %s2353_s3 = inlined_call_operand.vmem [shape: f32[1,32], index: 3, kind: input, shape index: {}]   ;;  %s2354_s4 = inlined_call_operand.vmem [shape: bf16[32,64], index: 4, kind: input, shape index: {}]   ;;  %s2355_s5 = inlined_call_operand.vmem [shape: f32[1,64], index: 5, kind: input, shape index: {}]   ;;  %s2356_s6 = inlined_call_operand.vmem [shape: bf16[4,8,32], index: 6, kind: input, shape index: {}]   ;;  %s2357_s7 = inlined_call_operand.vmem [shape: f32[1,32], index: 7, kind: input, shape index: {}]   ;;  %s2358_s8 = inlined_call_operand.vmem [shape: f32[2,1,8], index: 8, kind: input, shape index: {}]   ;;  %s2359_s9 = inlined_call_operand.vmem [shape: f32[1,32], index: 9, kind: input, shape index: {}]   ;;  %s2360_s10 = inlined_call_operand.vmem [shape: f32[1,32], index: 10, kind: input, shape index: {}]   ;;  %s2361_s11 = inlined_call_operand.vmem [shape: f32[2,8,32], index: 11, kind: output, shape index: {}]  }
   0x1 LB: > { %s1811_s18 = sadd.s32 4294967295, %s2009_s17   ;;  %p1815_p0 = scmp.ge.s32.totalorder %s2009_s17, 1  ;;  %s2009_s17 = sphi %s2080_s17, %s21_s17  }
   0x2   : > { %p353_p1 = scmp.lt.s32.totalorder %s2009_s17, 3 }
   0x4   : > { %p354_p2 = pnand %p1815_p0, %p353_p1 }
   0x5   : > { %p398_p3 = scmp.lt.s32.totalorder (!%p354_p2), %s1811_s18, 1  ;;  %s2013_s21 = smov (!%p354_p2), 104  }
   0x6   : > { %357 = sbr.rel (%p354_p2) target bundleno = 1654 (0x676), region = 64  ;;  %s2014_s22 = smov (!%p354_p2), 120  }
   0x7   : > { %s2015_s23 = smov (!%p354_p2), 112  }
   0xb   : > { %v1979_v0 = vld [vmem:[%s2354_s4 + $0x8] sm:$0xff]   ;;  %v2011_v1 = vmov 0.0   ;;  %v1981_v3 = vld [vmem:[%s2354_s4] sm:$0xff]   ;;  %vm2012_vm0 = vmmov 0   ;;  %s2363_s18 = smov (!%p398_p3, %s1811_s18), 1  ;;  %vm440_vm1 = vcmask 261120   ;;  %v563_v26 = vlaneseq }
   0xc   : > { %1882 = vmatprep.subr.bf16.mxu1 %v2011_v1  ;;  %1874 = vmatprep.subr.bf16.mxu0 %v2011_v1  ;;  %v1980_v2 = vld [vmem:[%s2352_s2 + $0x8] sm:$0xff]   ;;  %v1982_v4 = vld [vmem:[%s2352_s2] sm:$0xff]   ;;  %s2111_s27 = sshll.u32 %s2363_s18, 3  ;;  %v2016_v24 = vmov 1983009808   ;;  %v2018_v46 = vmov 0   ;;  %s408_s26 = scalar_lea.vmem %s2358_s8, %s2363_s18 }
   0xd   : > { %1883 = vmatpush3.bf16.msra.mxu1 %v1979_v0  ;;  %1886 = vmatprep.mubr.msk.bf16.mxu1 %vm2012_vm0, %v2011_v1  ;;  %s405_s30 = scalar_lea.vmem %s2351_s1, %s2111_s27  ;;  %s401_s14 = scalar_lea.vmem %s2350_s0, %s2111_s27  ;;  %v1823_v9 = vld [vmem:[%s2355_s5] ss:$0 sm:$0xff]  ;;  %v561_v25 = vunpack.c.l.s4 %v2016_v24  ;;  %v2017_v27 = vmov 1934713408   ;;  %v2144_v30 = vshrl.u32 %v563_v26, 7  ;;  %vm1066_vm2 = vcmask 64512  }
   0xe   : > { %1875 = vmatpush3.bf16.msra.mxu0 %v1980_v2  ;;  %1884 = vmatprep.subr.bf16.mxu1 %v2011_v1  ;;  %v415_v5 = vld [vmem:[%s405_s30] sm:$0xff]  ;;  %v578_v28 = vunpack.c.l.s4 %v2017_v27  ;;  %s2019_s18 = smov 96   ;;  %vm1313_vm5 = vcmask 1043456  }
   0xf   : > { %1876 = vmatprep.subr.bf16.mxu0 %v2011_v1  ;;  %1878 = vmatprep.mubr.msk.bf16.mxu0 %vm2012_vm0, %v2011_v1  ;;  %v484_v6 = vpack.c.bf16 %v415_v5, %v415_v5  ;;  %v2123_v7 = vld [vmem:[%s401_s14] sm:$0xff]  ;;  %v562_v29 = vunpack.c.0.s8 %v561_v25 }
  0x10   : > { %v416_v8 = vpack.c.bf16 %v2123_v7, %v2123_v7  ;;  %v1819_v10 = vld [vmem:[%s2353_s3] ss:$0 sm:$0xff]  ;;  %v579_v31 = vunpack.c.0.s8 %v578_v28 }
  0x11   : > { %1885 = vmatpush3.bf16.msra.mxu1 %v1981_v3  ;;  %v2147_v32 = vsub.s32 %v562_v29, %v2144_v30 }
  0x12   : > { %1877 = vmatpush3.bf16.msra.mxu0 %v1982_v4  ;;  %1896 = vmatprep.subr.bf16.mxu1 %v2011_v1  ;;  %v2156_v36 = vsub.s32 %v579_v31, %v2144_v30 }
  0x13   : > { %1890 = vmatprep.subr.bf16.mxu0 %v2011_v1 }
  0x14   : > { %1887 = vmatmul.mubr.msk.bf16.vlgmr.msra.gmra.mxu1 %vm440_vm1, %v484_v6 }
  0x15   : > { %1879 = vmatmul.mubr.msk.bf16.vlgmr.msra.gmra.mxu0 %vm440_vm1, %v416_v8  ;;  %1898 = vmatprep.mubr.msk.bf16.mxu1 %vm2012_vm0, %v2011_v1 }
  0x16   : > { %1892 = vmatprep.mubr.msk.bf16.mxu0 %vm2012_vm0, %v2011_v1 }
  0xd4   : > { %v545_v11 = vpop.f32.mrf.mxu1 }
  0xd5   : > { %v546_v12 = vadd.f32 %v1823_v9, %v545_v11  ;;  %v478_v13 = vpop.f32.mrf.mxu0 }
  0xd6   : > { %v479_v14 = vadd.f32 %v1819_v10, %v478_v13  ;;  %v1888_v15 = vpop.f32.mrf.mxu1 }
  0xd7   : > { %v2139_v16 = vpack.c.bf16 %v546_v12, %v546_v12  ;;  %v1880_v17 = vpop.f32.mrf.mxu0 }
  0xd8   : > { %v551_v18 = vmul.f32 0.35355338, %v479_v14  ;;  %v548_v19 = vpop.f32.mrf.mxu1 }
  0xd9   : > { %727 = vrot.lane.b32.xlu1 %v2139_v16, %s2013_s21  ;;  %723 = vrot.lane.b32.xlu0 %v2139_v16, %s2014_s22  ;;  %v481_v20 = vpop.f32.mrf.mxu0  ;;  %v735_v45 = vrot.slane %v2139_v16, %v2147_v32 }
  0xda   : > { %v552_v21 = vpack.c.bf16 %v551_v18, %v551_v18  ;;  %v1889_v22 = vpop.f32.mrf.mxu1 }
  0xdb   : > { %v1881_v23 = vpop.f32.mrf.mxu0 }
  0xdc   : > { %v566_v53 = vrot.slane %v552_v21, %v2147_v32 }
  0xdd   : > { %725 = vrot.lane.b32.xlu0 %v2139_v16, %s2015_s23  ;;  %554 = vrot.lane.b32.xlu1 %v552_v21, %s2014_s22 }
  0xe1   : > { %556 = vrot.lane.b32.xlu0 %v552_v21, %s2015_s23  ;;  %558 = vrot.lane.b32.xlu1 %v552_v21, %s2013_s21 }
 0x14b   : > { %v2149_v33 = vpop.permute.xlu1 %727  ;;  %v2151_v34 = vpop.permute.xlu0 %723 }
 0x14c   : > { %v777_v35 = vrot.slane %v2149_v33, %v2147_v32  ;;  %v769_v37 = vrot.slane %v2151_v34, %v2147_v32 }
 0x14e   : > { %v778_v38 = vcombine.low %v769_v37, %v777_v35  ;;  %v779_v39 = vcombine.high %v769_v37, %v777_v35 }
 0x14f   : > { %v2160_v40 = vpop.permute.xlu0 %725  ;;  %v555_v41 = vpop.permute.xlu1 %554 }
 0x150   : > { %v786_v42 = vrot.slane %v778_v38, %v2156_v36  ;;  %v793_v43 = vrot.slane %v779_v39, %v2156_v36  ;;  %v743_v44 = vrot.slane %v2160_v40, %v2147_v32  ;;  %v600_v49 = vrot.slane %v555_v41, %v2147_v32 }
 0x152   : > { %v794_v47 = vcombine.high %v786_v42, %v2018_v46  ;;  %v795_v48 = vcombine.high %v793_v43, %v2018_v46  ;;  %v744_v50 = vcombine.low %v735_v45, %v743_v44  ;;  %v745_v51 = vcombine.high %v735_v45, %v743_v44 }
 0x153   : > { %v557_v52 = vpop.permute.xlu0 %556  ;;  %v559_v54 = vpop.permute.xlu1 %558  ;;  %v801_v55 = vshrl.u32 %v786_v42, 16  ;;  %v817_v56 = vshrl.u32 %v793_v43, 16 }
 0x154   : > { %v574_v57 = vrot.slane %v557_v52, %v2147_v32  ;;  %v608_v58 = vrot.slane %v559_v54, %v2147_v32  ;;  %v809_v59 = vshrl.u32 %v794_v47, 16  ;;  %v825_v60 = vshrl.u32 %v795_v48, 16 }
 0x155   : > { %v752_v61 = vrot.slane %v744_v50, %v2156_v36  ;;  %v759_v62 = vrot.slane %v745_v51, %v2156_v36 }
 0x156   : > { %v575_v63 = vcombine.low %v566_v53, %v574_v57  ;;  %v576_v0 = vcombine.high %v566_v53, %v574_v57  ;;  %v609_v2 = vcombine.low %v600_v49, %v608_v58  ;;  %v610_v3 = vcombine.high %v600_v49, %v608_v58 }
 0x157   : > { %v760_v4 = vcombine.high %v752_v61, %v2018_v46  ;;  %v761_v5 = vcombine.high %v759_v62, %v2018_v46  ;;  %v798_v6 = vpack.i.b16 %v786_v42, %v752_v61  ;;  %v800_v8 = vshrl.u32 %v752_v61, 16 }
 0x158   : > { %v814_v9 = vpack.i.b16 %v793_v43, %v759_v62  ;;  %v816_v10 = vshrl.u32 %v759_v62, 16  ;;  %v583_v11 = vrot.slane %v575_v63, %v2156_v36  ;;  %v590_v12 = vrot.slane %v576_v0, %v2156_v36 }
 0x159   : > { %v802_v13 = vpack.i.b16 %v801_v55, %v800_v8  ;;  %v806_v14 = vpack.i.b16 %v794_v47, %v760_v4  ;;  %v808_v15 = vshrl.u32 %v760_v4, 16  ;;  %v822_v17 = vpack.i.b16 %v795_v48, %v761_v5 }
 0x15a   : > { %v818_v18 = vpack.i.b16 %v817_v56, %v816_v10  ;;  %v824_v19 = vshrl.u32 %v761_v5, 16  ;;  %v828_v20 = vcombine.low %v798_v6, %v814_v9  ;;  %v591_v21 = vcombine.high %v583_v11, %v2018_v46 }
 0x15b   : > { %v810_v22 = vpack.i.b16 %v809_v59, %v808_v15  ;;  %v836_v23 = vcombine.low %v806_v14, %v822_v17  ;;  %v592_v24 = vcombine.high %v590_v12, %v2018_v46  ;;  %v631_v27 = vshrl.u32 %v583_v11, 16 }
 0x15c   : > { %v826_v25 = vpack.i.b16 %v825_v60, %v824_v19  ;;  %v853_v26 = vcombine.low %v802_v13, %v818_v18  ;;  %v639_v28 = vshrl.u32 %v591_v21, 16  ;;  %v647_v29 = vshrl.u32 %v590_v12, 16 }
 0x15d   : > { %v655_v31 = vshrl.u32 %v592_v24, 16  ;;  %v617_v35 = vrot.slane %v609_v2, %v2156_v36  ;;  %v624_v37 = vrot.slane %v610_v3, %v2156_v36  ;;  %v835_v38 = vrot.slane %v828_v20, %v2147_v32 }
 0x15e   : > { %v843_v39 = vrot.slane %v836_v23, %v2147_v32  ;;  %v860_v41 = vrot.slane %v853_v26, %v2147_v32  ;;  %v861_v42 = vcombine.low %v810_v22, %v826_v25 }
 0x15f   : > { %v625_v43 = vcombine.high %v617_v35, %v2018_v46  ;;  %v626_v44 = vcombine.high %v624_v37, %v2018_v46  ;;  %v629_v45 = vpack.i.b16 %v617_v35, %v583_v11  ;;  %v632_v47 = vshrl.u32 %v617_v35, 16 }
 0x160   : > { %v645_v48 = vpack.i.b16 %v624_v37, %v590_v12  ;;  %v648_v49 = vshrl.u32 %v624_v37, 16  ;;  %v844_v50 = vcombine.low %v835_v38, %v843_v39  ;;  %v868_v51 = vrot.slane %v861_v42, %v2147_v32 }
 0x161   : > { %v633_v52 = vpack.i.b16 %v632_v47, %v631_v27  ;;  %v637_v53 = vpack.i.b16 %v625_v43, %v591_v21  ;;  %v640_v54 = vshrl.u32 %v625_v43, 16  ;;  %v653_v55 = vpack.i.b16 %v626_v44, %v592_v24 }
 0x162   : > { %v649_v56 = vpack.i.b16 %v648_v49, %v647_v29  ;;  %v656_v57 = vshrl.u32 %v626_v44, 16  ;;  %v659_v58 = vcombine.low %v629_v45, %v645_v48  ;;  %v851_v59 = vrot.slane %v844_v50, %v2156_v36  ;;  %v1060_v44 = vld [vmem:[%s408_s26] sm:$0x1] }
 0x163   : > { %v641_v60 = vpack.i.b16 %v640_v54, %v639_v28  ;;  %v667_v61 = vcombine.low %v637_v53, %v653_v55  ;;  %v869_v62 = vcombine.low %v860_v41, %v868_v51  ;;  %vm1251_vm3 = vcmp.lt.f32.partialorder %v1060_v44, 0.5 }
 0x164   : > { %v657_v63 = vpack.i.b16 %v656_v57, %v655_v31  ;;  %v684_v0 = vcombine.low %v633_v52, %v649_v56  ;;  %v666_v2 = vrot.slane %v659_v58, %v2147_v32  ;;  %v881_v6 = vshrl.u32 %v851_v59, 16 }
 0x165   : > { %v674_v3 = vrot.slane %v667_v61, %v2147_v32  ;;  %v876_v4 = vrot.slane %v869_v62, %v2156_v36  ;;  %v852_v17 = vcombine.high %v851_v59, %v2018_v46  ;;  %v1255_v45 = vsub.s32 0, %v2144_v30 }
 0x166   : > { %v692_v5 = vcombine.low %v641_v60, %v657_v63  ;;  %v691_v12 = vrot.slane %v684_v0, %v2147_v32  ;;  %v1252_v47 = vsel %vm1251_vm3, 1, %v2018_v46 }
 0x167   : > { %v675_v8 = vcombine.low %v666_v2, %v674_v3  ;;  %v880_v9 = vpack.i.b16 %v876_v4, %v851_v59  ;;  %v882_v10 = vshrl.u32 %v876_v4, 16  ;;  %v877_v11 = vcombine.high %v876_v4, %v2018_v46 }
 0x168   : > { %v699_v13 = vrot.slane %v692_v5, %v2147_v32  ;;  %v887_v24 = vshrl.u32 %v852_v17, 16  ;;  %v1256_v48 = vrot.slane %v1252_v47, %v1255_v45 }
 0x169   : > { %v1071_v14 = vsel %vm1066_vm2, %v880_v9, 0  ;;  %v883_v15 = vpack.i.b16 %v882_v10, %v881_v6  ;;  %v682_v20 = vrot.slane %v675_v8, %v2156_v36  ;;  %v888_v21 = vshrl.u32 %v877_v11, 16 }
 0x16a   : > { %v700_v18 = vcombine.low %v691_v12, %v699_v13  ;;  %1891 = vmatpush3.bf16.xpose.msra.mxu0 %v1071_v14  ;;  %v886_v23 = vpack.i.b16 %v877_v11, %v852_v17  ;;  %vm1257_vm4 = vcmp.eq.s32.totalorder %v1256_v48, 1 }
 0x16b   : > { %v1117_v19 = vsel %vm1066_vm2, %v883_v15, 0  ;;  %1902 = vmatprep.subr.bf16.mxu0 %v2011_v1  ;;  %v712_v27 = vshrl.u32 %v682_v20, 16  ;;  %v889_v28 = vpack.i.b16 %v888_v21, %v887_v24  ;;  %v683_v38 = vcombine.high %v682_v20, %v2018_v46 }
 0x16c   : > { %1897 = vmatpush3.bf16.xpose.msra.mxu1 %v1117_v19  ;;  %v707_v22 = vrot.slane %v700_v18, %v2156_v36  ;;  %v1163_v29 = vsel %vm1066_vm2, %v886_v23, 0 }
 0x16d   : > { %1908 = vmatprep.subr.bf16.mxu1 %v2011_v1  ;;  %v1209_v37 = vsel %vm1066_vm2, %v889_v28, 0  ;;  %v718_v42 = vshrl.u32 %v683_v38, 16 }
 0x16e   : > { %v713_v25 = vshrl.u32 %v707_v22, 16  ;;  %v711_v26 = vpack.i.b16 %v707_v22, %v682_v20  ;;  %v708_v35 = vcombine.high %v707_v22, %v2018_v46 }
 0x170   : > { %v714_v31 = vpack.i.b16 %v713_v25, %v712_v27  ;;  %v719_v39 = vshrl.u32 %v708_v35, 16  ;;  %v717_v41 = vpack.i.b16 %v708_v35, %v683_v38 }
 0x171   : > { %1893 = vmatmul.mubr.msk.bf16.vlgmr.msra.gmra.mxu0 %vm1066_vm2, %v711_v26 }
 0x172   : > { %1903 = vmatpush3.bf16.xpose.msra.mxu0 %v1163_v29  ;;  %1904 = vmatprep.mubr.msk.bf16.mxu0 %vm2012_vm0, %v2011_v1  ;;  %v720_v43 = vpack.i.b16 %v719_v39, %v718_v42 }
 0x173   : > { %1899 = vmatmul.mubr.msk.bf16.vlgmr.msra.gmra.mxu1 %vm1066_vm2, %v714_v31  ;;  %1914 = vmatprep.subr.bf16.mxu0 %v2011_v1 }
 0x174   : > { %1909 = vmatpush3.bf16.xpose.msra.mxu1 %v1209_v37  ;;  %1910 = vmatprep.mubr.msk.bf16.mxu1 %vm2012_vm0, %v2011_v1 }
 0x175   : > { %1920 = vmatprep.subr.bf16.mxu1 %v2011_v1 }
 0x179   : > { %1905 = vmatmul.mubr.msk.bf16.vlgmr.msra.gmra.mxu0 %vm1066_vm2, %v717_v41 }
 0x17a   : > { %1916 = vmatprep.mubr.msk.bf16.mxu0 %vm2012_vm0, %v2011_v1 }
 0x17b   : > { %1911 = vmatmul.mubr.msk.bf16.vlgmr.msra.gmra.mxu1 %vm1066_vm2, %v720_v43 }
 0x17c   : > { %1922 = vmatprep.mubr.msk.bf16.mxu1 %vm2012_vm0, %v2011_v1 }
 0x231   : > { %v1107_v49 = vpop.f32.mrf.mxu0 }
 0x232   : > { %v1258_v50 = vsel %vm1257_vm4, -1e+09, %v1107_v49 }
 0x233   : > { %v1894_v51 = vpop.f32.mrf.mxu0  ;;  %v1153_v52 = vpop.f32.mrf.mxu1  ;;  %v1262_v53 = vsel %vm1066_vm2, %v1258_v50, -inf }
 0x234   : > { %v1259_v54 = vsel %vm1257_vm4, -1e+09, %v1153_v52  ;;  %1263 = vmax.xlane.f32.xlu0 %v1262_v53 }
 0x235   : > { %v1110_v55 = vpop.f32.mrf.mxu0  ;;  %v1900_v56 = vpop.f32.mrf.mxu1  ;;  %v1265_v57 = vsel %vm1066_vm2, %v1259_v54, -inf }
 0x236   : > { %1266 = vmax.xlane.f32.xlu1 %v1265_v57 }
 0x237   : > { %v1895_v30 = vpop.f32.mrf.mxu0  ;;  %v1156_v58 = vpop.f32.mrf.mxu1 }
 0x239   : > { %v1901_v59 = vpop.f32.mrf.mxu1  ;;  %v1199_v60 = vpop.f32.mrf.mxu0 }
 0x23a   : > { %v1260_v61 = vsel %vm1257_vm4, -1e+09, %v1199_v60 }
 0x23b   : > { %v1906_v62 = vpop.f32.mrf.mxu0  ;;  %v1245_v63 = vpop.f32.mrf.mxu1  ;;  %v1268_v0 = vsel %vm1066_vm2, %v1260_v61, -inf }
 0x23c   : > { %v1261_v2 = vsel %vm1257_vm4, -1e+09, %v1245_v63  ;;  %1269 = vmax.xlane.f32.xlu0 %v1268_v0 }
 0x23d   : > { %v1202_v3 = vpop.f32.mrf.mxu0  ;;  %v1912_v4 = vpop.f32.mrf.mxu1  ;;  %v1271_v8 = vsel %vm1066_vm2, %v1261_v2, -inf }
 0x23f   : > { %v1907_v5 = vpop.f32.mrf.mxu0  ;;  %v1248_v6 = vpop.f32.mrf.mxu1 }
 0x240   : > { %1272 = vmax.xlane.f32.xlu0 %v1271_v8 }
 0x241   : > { %v1913_v9 = vpop.f32.mrf.mxu1 }
 0x247   : > { %890 = vrot.lane.b32.xlu1 %v2139_v16, %s2019_s18 }
 0x2bd   : > { %v1264_v10 = vpop.xlane.xlu0 %1263 }
 0x2be   : > { %v1274_v11 = vsub.f32 %v1258_v50, %v1264_v10 }
 0x2bf   : > { %v1267_v12 = vpop.xlane.xlu1 %1266 }
 0x2c0   : > { %v1278_v13 = vmul.f32 1.442695, %v1274_v11  ;;  %v1275_v14 = vsub.f32 %v1259_v54, %v1267_v12 }
 0x2c2   : > { %1983 = vpow2.f32 %v1278_v13  ;;  %v1280_v15 = vmul.f32 1.442695, %v1275_v14 }
 0x2c4   : > { %1985 = vpow2.f32 %v1280_v15 }
 0x2c5   : > { %v1270_v16 = vpop.xlane.xlu0 %1269 }
 0x2c6   : > { %v1276_v22 = vsub.f32 %v1260_v61, %v1270_v16 }
 0x2c8   : > { %v1282_v24 = vmul.f32 1.442695, %v1276_v22 }
 0x2c9   : > { %v1273_v21 = vpop.xlane.xlu0 %1272 }
 0x2ca   : > { %v1277_v23 = vsub.f32 %v1261_v2, %v1273_v21  ;;  %1987 = vpow2.f32 %v1282_v24 }
 0x2cc   : > { %v1284_v25 = vmul.f32 1.442695, %v1277_v23 }
 0x2ce   : > { %1989 = vpow2.f32 %v1284_v25 }
 0x2cf   : > { %v2237_v17 = vpop.eup %1983 }
 0x2d0   : > { %v1286_v18 = vsel %vm1066_vm2, %v2237_v17, 0.0 }
 0x2d1   : > { %v2241_v19 = vpop.eup %1985  ;;  %1287 = vadd.xlane.f32.xlu1 %v1286_v18 }
 0x2d2   : > { %v1289_v20 = vsel %vm1066_vm2, %v2241_v19, 0.0 }
 0x2d3   : > { %1290 = vadd.xlane.f32.xlu0 %v1289_v20 }
 0x2d7   : > { %v2248_v26 = vpop.eup %1987 }
 0x2d8   : > { %v1292_v28 = vsel %vm1066_vm2, %v2248_v26, 0.0 }
 0x2db   : > { %v2250_v27 = vpop.eup %1989 }
 0x2e2   : > { %894 = vrot.lane.b32.xlu1 %v2160_v40, %s2019_s18 }
 0x2e6   : > { %896 = vrot.lane.b32.xlu1 %v2149_v33, %s2019_s18  ;;  %v1295_v33 = vsel %vm1066_vm2, %v2250_v27, 0.0 }
 0x2e9   : > { %892 = vrot.lane.b32.xlu0 %v2151_v34, %s2019_s18  ;;  %v891_v34 = vpop.permute.xlu1 %890  ;;  %s412_s18 = scalar_lea.vmem %s2361_s11, %s2111_s27 }
 0x2ea   : > { %v905_v35 = vrot.slane %v891_v34, %v2147_v32 }
 0x308   : > { %1293 = vadd.xlane.f32.xlu0 %v1292_v28 }
 0x30a   : > { %1296 = vadd.xlane.f32.xlu1 %v1295_v33 }
 0x35a   : > { %v1288_v40 = vpop.xlane.xlu1 %1287 }
 0x35b   : > { %1991 = vrcp.f32 %v1288_v40 }
 0x35c   : > { %v1291_v29 = vpop.xlane.xlu0 %1290 }
 0x35d   : > { %1993 = vrcp.f32 %v1291_v29 }
 0x35e   : > { %v895_v31 = vpop.permute.xlu1 %894 }
 0x35f   : > { %v913_v37 = vrot.slane %v895_v31, %v2147_v32 }
 0x360   : > { %v893_v41 = vpop.permute.xlu0 %892 }
 0x361   : > { %v914_v38 = vcombine.low %v905_v35, %v913_v37  ;;  %v915_v39 = vcombine.high %v905_v35, %v913_v37  ;;  %v939_v45 = vrot.slane %v893_v41, %v2147_v32 }
 0x362   : > { %v897_v42 = vpop.permute.xlu1 %896 }
 0x363   : > { %v922_v43 = vrot.slane %v914_v38, %v2156_v36  ;;  %v947_v44 = vrot.slane %v897_v42, %v2147_v32  ;;  %v929_v47 = vrot.slane %v915_v39, %v2156_v36 }
 0x365   : > { %v948_v48 = vcombine.low %v939_v45, %v947_v44  ;;  %v949_v49 = vcombine.high %v939_v45, %v947_v44  ;;  %v930_v50 = vcombine.high %v922_v43, %v2018_v46  ;;  %v931_v53 = vcombine.high %v929_v47, %v2018_v46 }
 0x366   : > { %v970_v54 = vshrl.u32 %v922_v43, 16  ;;  %v986_v59 = vshrl.u32 %v929_v47, 16 }
 0x367   : > { %v956_v51 = vrot.slane %v948_v48, %v2156_v36  ;;  %v963_v52 = vrot.slane %v949_v49, %v2156_v36  ;;  %v978_v58 = vshrl.u32 %v930_v50, 16  ;;  %v994_v3 = vshrl.u32 %v931_v53, 16 }
 0x368   : > { %v1992_v21 = vpop.eup %1991 }
 0x369   : > { %v964_v55 = vcombine.high %v956_v51, %v2018_v46  ;;  %v965_v56 = vcombine.high %v963_v52, %v2018_v46  ;;  %v968_v57 = vpack.i.b16 %v956_v51, %v922_v43  ;;  %v971_v30 = vshrl.u32 %v956_v51, 16 }
 0x36a   : > { %v984_v60 = vpack.i.b16 %v963_v52, %v929_v47  ;;  %v987_v61 = vshrl.u32 %v963_v52, 16  ;;  %v1994_v23 = vpop.eup %1993  ;;  %v1302_v28 = vmul.f32 %v1992_v21, %v2237_v17  ;;  %v1061_v52 = vld [vmem:[%s2356_s6] sm:$0xf] }
 0x36b   : > { %v972_v62 = vpack.i.b16 %v971_v30, %v970_v54  ;;  %v976_v63 = vpack.i.b16 %v964_v55, %v930_v50  ;;  %v979_v0 = vshrl.u32 %v964_v55, 16  ;;  %v992_v2 = vpack.i.b16 %v965_v56, %v931_v53  ;;  %v1063_v54 = vld [vmem:[%s2356_s6 + $0x8] sm:$0xf] }
 0x36c   : > { %v988_v4 = vpack.i.b16 %v987_v61, %v986_v59  ;;  %v995_v5 = vshrl.u32 %v965_v56, 16  ;;  %v998_v6 = vcombine.low %v968_v57, %v984_v60  ;;  %v1303_v31 = vmul.f32 %v1994_v23, %v2241_v19  ;;  %v1064_v56 = vld [vmem:[%s2356_s6 + $0xc] sm:$0xf] }
 0x36d   : > { %v980_v8 = vpack.i.b16 %v979_v0, %v978_v58  ;;  %v1006_v9 = vcombine.low %v976_v63, %v992_v2  ;;  %v1595_v30 = vsel %vm1313_vm5, %v1063_v54, 0  ;;  %v1641_v61 = vsel %vm1313_vm5, %v1064_v56, 0  ;;  %v1840_v54 = vld [vmem:[%s2359_s9] ss:$0 sm:$0xff] }
 0x36e   : > { %v996_v10 = vpack.i.b16 %v995_v5, %v994_v3  ;;  %v1023_v11 = vcombine.low %v972_v62, %v988_v4  ;;  %v1005_v12 = vrot.slane %v998_v6, %v2147_v32  ;;  %v1307_v42 = vpack.c.bf16 %v1303_v31, %v1303_v31 }
 0x36f   : > { %v1013_v13 = vrot.slane %v1006_v9, %v2147_v32 }
 0x370   : > { %v1031_v14 = vcombine.low %v980_v8, %v996_v10  ;;  %v1030_v18 = vrot.slane %v1023_v11, %v2147_v32 }
 0x371   : > { %v1014_v15 = vcombine.low %v1005_v12, %v1013_v13 }
 0x372   : > { %v1038_v20 = vrot.slane %v1031_v14, %v2147_v32 }
 0x373   : > { %v1021_v16 = vrot.slane %v1014_v15, %v2156_v36 }
 0x374   : > { %v1039_v22 = vcombine.low %v1030_v18, %v1038_v20 }
 0x375   : > { %v1022_v24 = vcombine.high %v1021_v16, %v2018_v46  ;;  %v1051_v34 = vshrl.u32 %v1021_v16, 16 }
 0x376   : > { %v1046_v25 = vrot.slane %v1039_v22, %v2156_v36  ;;  %v1306_v36 = vpack.c.bf16 %v1302_v28, %v1302_v28 }
 0x377   : > { %v1057_v32 = vshrl.u32 %v1022_v24, 16 }
 0x378   : > { %v1050_v33 = vpack.i.b16 %v1046_v25, %v1021_v16  ;;  %v1052_v40 = vshrl.u32 %v1046_v25, 16  ;;  %v1047_v29 = vcombine.high %v1046_v25, %v2018_v46 }
 0x37a   : > { %v1315_v35 = vsel %vm1313_vm5, %v1050_v33, 0  ;;  %v1053_v37 = vpack.i.b16 %v1052_v40, %v1051_v34  ;;  %v1056_v38 = vpack.i.b16 %v1047_v29, %v1022_v24  ;;  %v1058_v39 = vshrl.u32 %v1047_v29, 16 }
 0x37b   : > { %1915 = vmatpush3.bf16.msra.mxu0 %v1315_v35 }
 0x37c   : > { %v1361_v41 = vsel %vm1313_vm5, %v1053_v37, 0  ;;  %1926 = vmatprep.subr.bf16.mxu0 %v2011_v1  ;;  %v1059_v17 = vpack.i.b16 %v1058_v39, %v1057_v32  ;;  %v1407_v46 = vsel %vm1313_vm5, %v1056_v38, 0  ;;  %v1839_v32 = vld [vmem:[%s2357_s7] ss:$0 sm:$0xff] }
 0x37d   : > { %1921 = vmatpush3.bf16.msra.mxu1 %v1361_v41 }
 0x37e   : > { %1917 = vmatmul.mubr.msk.bf16.vlgmr.msra.gmra.mxu0 %vm1066_vm2, %v1306_v36  ;;  %1932 = vmatprep.subr.bf16.mxu1 %v2011_v1  ;;  %v1453_v19 = vsel %vm1313_vm5, %v1059_v17, 0 }
 0x37f   : > { %1927 = vmatpush3.bf16.msra.mxu0 %v1407_v46  ;;  %1928 = vmatprep.mubr.msk.bf16.mxu0 %vm2012_vm0, %v2011_v1 }
 0x380   : > { %1923 = vmatmul.mubr.msk.bf16.vlgmr.msra.gmra.mxu1 %vm1066_vm2, %v1307_v42  ;;  %1938 = vmatprep.subr.bf16.mxu0 %v2011_v1 }
 0x381   : > { %1933 = vmatpush3.bf16.msra.mxu1 %v1453_v19  ;;  %1934 = vmatprep.mubr.msk.bf16.mxu1 %vm2012_vm0, %v2011_v1 }
 0x382   : > { %1944 = vmatprep.subr.bf16.mxu1 %v2011_v1 }
 0x391   : > { %v1294_v43 = vpop.xlane.xlu0 %1293 }
 0x392   : > { %1995 = vrcp.f32 %v1294_v43 }
 0x393   : > { %v1297_v44 = vpop.xlane.xlu1 %1296 }
 0x394   : > { %1997 = vrcp.f32 %v1297_v44 }
 0x39f   : > { %v1996_v45 = vpop.eup %1995 }
 0x3a0   : > { %v1304_v47 = vmul.f32 %v1996_v45, %v2248_v26  ;;  %v1503_v26 = vsel %vm1313_vm5, %v1061_v52, 0 }
 0x3a1   : > { %v1998_v48 = vpop.eup %1997 }
 0x3a2   : > { %v1308_v49 = vpack.c.bf16 %v1304_v47, %v1304_v47  ;;  %v1305_v50 = vmul.f32 %v1998_v48, %v2250_v27  ;;  %v1062_v27 = vld [vmem:[%s2356_s6 + $0x4] sm:$0xf] }
 0x3a3   : > { %v1549_v53 = vsel %vm1313_vm5, %v1062_v27, 0 }
 0x3a4   : > { %1929 = vmatmul.mubr.msk.bf16.vlgmr.msra.gmra.mxu0 %vm1066_vm2, %v1308_v49  ;;  %v1309_v51 = vpack.c.bf16 %v1305_v50, %v1305_v50 }
 0x3a5   : > { %1940 = vmatprep.mubr.msk.bf16.mxu0 %vm2012_vm0, %v2011_v1  ;;  %1939 = vmatpush3.bf16.msra.mxu0 %v1503_v26 }
 0x3a6   : > { %1935 = vmatmul.mubr.msk.bf16.vlgmr.msra.gmra.mxu1 %vm1066_vm2, %v1309_v51  ;;  %1950 = vmatprep.subr.bf16.mxu0 %v2011_v1 }
 0x3a7   : > { %1946 = vmatprep.mubr.msk.bf16.mxu1 %vm2012_vm0, %v2011_v1  ;;  %1945 = vmatpush3.bf16.msra.mxu1 %v1549_v53 }
 0x3a8   : > { %1956 = vmatprep.subr.bf16.mxu1 %v2011_v1 }
 0x43e   : > { %v1351_v55 = vpop.f32.mrf.mxu0 }
 0x43f   : > { %v1495_v57 = vpack.c.bf16 %v1351_v55, %v1351_v55 }
 0x440   : > { %v1918_v58 = vpop.f32.mrf.mxu0  ;;  %v1397_v59 = vpop.f32.mrf.mxu1 }
 0x441   : > { %v1496_v60 = vpack.c.bf16 %v1397_v59, %v1397_v59  ;;  %1941 = vmatmul.mubr.msk.bf16.vlgmr.msra.gmra.mxu0 %vm1066_vm2, %v1495_v57  ;;  %v1841_v57 = vld [vmem:[%s2360_s10] ss:$0 sm:$0xff] }
 0x442   : > { %v1354_v62 = vpop.f32.mrf.mxu0  ;;  %v1924_v63 = vpop.f32.mrf.mxu1  ;;  %1951 = vmatpush3.bf16.msra.mxu0 %v1595_v30  ;;  %1952 = vmatprep.mubr.msk.bf16.mxu0 %vm2012_vm0, %v2011_v1 }
 0x443   : > { %1947 = vmatmul.mubr.msk.bf16.vlgmr.msra.gmra.mxu1 %vm1066_vm2, %v1496_v60 }
 0x444   : > { %v1919_v0 = vpop.f32.mrf.mxu0  ;;  %v1400_v2 = vpop.f32.mrf.mxu1  ;;  %1957 = vmatpush3.bf16.msra.mxu1 %v1641_v61  ;;  %1958 = vmatprep.mubr.msk.bf16.mxu1 %vm2012_vm0, %v2011_v1 }
 0x446   : > { %v1925_v3 = vpop.f32.mrf.mxu1 }
 0x464   : > { %v1443_v4 = vpop.f32.mrf.mxu0 }
 0x465   : > { %v1497_v5 = vpack.c.bf16 %v1443_v4, %v1443_v4 }
 0x466   : > { %v1930_v6 = vpop.f32.mrf.mxu0  ;;  %v1489_v8 = vpop.f32.mrf.mxu1 }
 0x467   : > { %v1498_v9 = vpack.c.bf16 %v1489_v8, %v1489_v8  ;;  %1953 = vmatmul.mubr.msk.bf16.vlgmr.msra.gmra.mxu0 %vm1066_vm2, %v1497_v5 }
 0x468   : > { %v1446_v10 = vpop.f32.mrf.mxu0  ;;  %v1936_v11 = vpop.f32.mrf.mxu1 }
 0x469   : > { %1959 = vmatmul.mubr.msk.bf16.vlgmr.msra.gmra.mxu1 %vm1066_vm2, %v1498_v9 }
 0x46a   : > { %v1931_v12 = vpop.f32.mrf.mxu0  ;;  %v1492_v13 = vpop.f32.mrf.mxu1 }
 0x46c   : > { %v1937_v14 = vpop.f32.mrf.mxu1 }
 0x501   : > { %v1539_v15 = vpop.f32.mrf.mxu0 }
 0x502   : > { %v1683_v25 = vsel %vm440_vm1, %v1539_v15, 0.0 }
 0x503   : > { %v1942_v18 = vpop.f32.mrf.mxu0  ;;  %v1585_v20 = vpop.f32.mrf.mxu1 }
 0x504   : > { %v1684_v24 = vsel %vm440_vm1, %v1585_v20, 0.0 }
 0x505   : > { %v1542_v16 = vpop.f32.mrf.mxu0  ;;  %v1948_v1 = vpop.f32.mrf.mxu1  ;;  %v1685_v28 = vadd.f32 %v1684_v24, %v1683_v25 }
 0x507   : > { %v1943_v21 = vpop.f32.mrf.mxu0  ;;  %v1588_v22 = vpop.f32.mrf.mxu1 }
 0x509   : > { %v1949_v23 = vpop.f32.mrf.mxu1 }
 0x527   : > { %v1631_v33 = vpop.f32.mrf.mxu0 }
 0x528   : > { %v1686_v34 = vsel %vm440_vm1, %v1631_v33, 0.0 }
 0x529   : > { %v1687_v40 = vadd.f32 %v1686_v34, %v1685_v28  ;;  %v1954_v29 = vpop.f32.mrf.mxu0  ;;  %v1677_v31 = vpop.f32.mrf.mxu1 }
 0x52a   : > { %v1688_v35 = vsel %vm440_vm1, %v1677_v31, 0.0 }
 0x52b   : > { %v1689_v37 = vadd.f32 %v1688_v35, %v1687_v40  ;;  %v1634_v38 = vpop.f32.mrf.mxu0  ;;  %v1960_v39 = vpop.f32.mrf.mxu1 }
 0x52d   : > { %v1696_v41 = vadd.f32 %v1839_v32, %v1689_v37  ;;  %v1955_v36 = vpop.f32.mrf.mxu0  ;;  %v1680_v17 = vpop.f32.mrf.mxu1 }
 0x52f   : > { %v1961_v46 = vpop.f32.mrf.mxu1  ;;  %v1697_v42 = vadd.f32 %v1696_v41, %v2123_v7 }
 0x531   : > { %v1700_v19 = vsel %vm440_vm1, %v1697_v42, 0.0 }
 0x532   : > { %1701 = vadd.xlane.f32.xlu0 %v1700_v19 }
 0x5bb   : > { %v1702_v43 = vpop.xlane.xlu0 %1701 }
 0x5bc   : > { %v1704_v44 = vmul.f32 0.03125, %v1702_v43 }
 0x5be   : > { %v1705_v45 = vsub.f32 %v1697_v42, %v1704_v44 }
 0x5c0   : > { %v1706_v47 = vmul.f32 %v1705_v45, %v1705_v45  ;;  %v1727_v55 = vmul.f32 %v1840_v54, %v1705_v45 }
 0x5c2   : > { %v1707_v48 = vsel %vm440_vm1, %v1706_v47, 0.0 }
 0x5c3   : > { %1708 = vadd.xlane.f32.xlu0 %v1707_v48 }
 0x64c   : > { %v1709_v49 = vpop.xlane.xlu0 %1708 }
 0x64d   : > { %v1711_v50 = vmul.f32 0.032258064, %v1709_v49 }
 0x64f   : > { %1999 = vrsqrt.f32 %v1711_v50  ;;  %vm1714_vm6 = vcmp.eq.f32.partialorder %v1711_v50, inf  ;;  %v1717_v26 = vand.u32 2147483648, %v1711_v50  ;;  %vm1716_vm7 = vcmp.eq.f32.partialorder %v1711_v50, 0.0 }
 0x65c   : > { %v2000_v51 = vpop.eup %1999 }
 0x65d   : > { %v1713_v52 = vmul.f32 %v2000_v51, %v1711_v50 }
 0x65f   : > { %v1715_v27 = vsel %vm1714_vm6, %v1711_v50, %v1713_v52 }
 0x660   : > { %v1718_v7 = vsel %vm1716_vm7, %v1717_v26, %v1715_v27 }
 0x661   : > { %v1719_v53 = vadd.f32 1e-06, %v1718_v7 }
 0x663   : > { %2001 = vrcp.f32 %v1719_v53 }
 0x670   : > { %v2002_v56 = vpop.eup %2001 }
 0x671   : > { %v1728_v30 = vmul.f32 %v2002_v56, %v1727_v55 }
 0x673   : > { %v1735_v58 = vadd.f32 %v1841_v57, %v1728_v30 }
 0x675   : > { %1736 = vst.msk [vmem:[%s412_s18] sm:$0xff] %vm440_vm1, %v1735_v58 }
 0x676 PF: > { %s21_s17 = sadd.s32 1, %s2009_s17  }
 0x677   : > { %p18_p4 = scmp.ge.s32.totalorder %s21_s17, 4  }
 0x679   :  { %20 = sbr.rel (!%p18_p4) target bundleno = 1 (0x1), region = 100 }

// kernel: decoder_layer.3
= control target key start
LH: loop header
LB: loop body
LE: loop exit
PB: predicated region body
PF: predicated region fallthrough
CT: control target
= control target key end

     0   :  { %13 = vsyncpa [#allocation3], 0  ;;  %s2528_s0 = inlined_call_operand.hbm [shape: f32[2,8,32], index: 0, kind: input, shape index: {}]   ;;  %s2529_s1 = inlined_call_operand.vmem [shape: bf16[32,96], index: 1, kind: input, shape index: {}]   ;;  %s2530_s2 = inlined_call_operand.vmem [shape: f32[1,96], index: 2, kind: input, shape index: {}]   ;;  %s2531_s3 = inlined_call_operand.hbm [shape: bf16[4,8,32], index: 3, kind: input, shape index: {}]   ;;  %s2532_s4 = inlined_call_operand.vmem [shape: f32[1,32], index: 4, kind: input, shape index: {}]   ;;  %s2533_s5 = inlined_call_operand.hbm [shape: f32[2,8,8], index: 5, kind: input, shape index: {}]   ;;  %s2534_s6 = inlined_call_operand.vmem [shape: f32[1,32], index: 6, kind: input, shape index: {}]   ;;  %s2535_s7 = inlined_call_operand.vmem [shape: f32[1,32], index: 7, kind: input, shape index: {}]   ;;  %s2536_s8 = inlined_call_operand.vmem [shape: f32[2,8,32], index: 8, kind: output, shape index: {}]  }
   0x1   :  { %15 = vsyncpa [#allocation3 + $0x1], 0 }
   0x2   :  { %16 = vsyncpa [#allocation5], 0  ;;  %s2142_s27 = smov 0   ;;  %s2144_s28 = smov 0  }
   0x3   :  { %s2146_s29 = smov 0   ;;  %s2148_s30 = smov 0  }
   0x4 LB: > { %s2163_s9 = sadd.s32 1, %s2080_s30   ;;  %s29_s10 = sadd.s32 1, %s2076_s29  ;;  %s2080_s30 = sphi %s2148_s30, %s2553_s30   ;;  %s2076_s29 = sphi %s2146_s29, %s2552_s29   ;;  %s2072_s28 = sphi %s2144_s28, %s2551_s28   ;;  %s2068_s27 = sphi %s2142_s27, %s2550_s27  }
   0x5   : > { %s26_s11 = ssub.s32 %s2080_s30, %s2163_s9  ;;  %p36_p0 = scmp.ne.s32.totalorder %s2076_s29, %s2072_s28 }
   0x6   : > { %p27_p1 = scmp.eq.s32.totalorder %s26_s11, 0  ;;  %p37_p2 = scmp.eq.s32.totalorder %s2080_s30, 0 }
   0x7   : > { %p1887_p3 = scmp.lt.s32.totalorder %s2080_s30, 2  ;;  %s272_s13 = sand.u32 1, %s2080_s30  }
   0x8   : > { %s2173_s12 = scalar_select %p27_p1, %s2076_s29, %s29_s10  }
   0x9   : > { %p38_p4 = por %p37_p2, %p36_p0  ;;  %s274_s14 = sand.u32 1, %s2076_s29  }
   0xa   : > { %s2177_s15 = sshll.u32 %s274_s14, 3  ;;  %s1731_s16 = sshll.u32 %s2080_s30, 7 }
   0xb   : > { %s2185_s19 = scalar_lea.hbm %s2528_s0, %s1731_s16  ;;  %s276_s20 = scalar_lea.vmem [#allocation2], %s2177_s15 }
   0xc   : > { %s283_s21 = sshll.u32 %s276_s20, 4  ;;  %p2188_p5 = pnand %p1887_p3, %p38_p4  ;;  %s284_s21 = int_to_ptr.vmem [resolvable:$true] %s283_s21 }
   0xd   : > { %s2192_s23 = scalar_lea.sflag [#allocation3], %s272_s13  ;;  %s1956_s24 = scalar_lea.hbm %s2185_s19, 128 }
   0xe   : > { %p1957_p6 = scmp.ne.s32.totalorder %s2185_s19, %s1956_s24  ;;  %p1958_p7 = pneg %p2188_p5 }
   0xf   : > { %s1961_s10 = scalar_lea.hbm %s2528_s0, 256  ;;  %p1962_p10 = scmp.lt.s32.totalorder %s2185_s19, %s2528_s0 }
  0x10   : > { %p1959_p8 = pnand %p1958_p7, %p1957_p6  ;;  %p1963_p11 = scmp.lt.s32.totalorder %s1961_s10, %s1956_s24 }
  0x12   : > { %p1960_p9 = pneg %p1959_p8  ;;  %p1964_p12 = por %p1963_p11, %p1962_p10 }
  0x14   : > { %p1965_p13 = pnand %p1964_p12, %p1960_p9 }
  0x16   : > { %1968 = shalt.err (!%p1965_p13)
}
  0x17   : > { %s1969_s13 = scalar_lea.vmem %s284_s21, 128  ;;  %s2082_s17 = smov [#allocation2]  }
  0x18   : > { %p1970_p0 = scmp.ne.s32.totalorder %s284_s21, %s1969_s13  ;;  %s1974_s18 = sshll.u32 %s2082_s17, 4  ;;  %s1975_s18 = int_to_ptr.vmem [resolvable:$false] %s1974_s18 }
  0x19   : > { %s1976_s20 = scalar_lea.vmem %s1975_s18, 256  ;;  %p1977_p3 = scmp.lt.s32.totalorder %s284_s21, %s1975_s18 }
  0x1a   : > { %p1972_p1 = pnand %p1970_p0, %p1958_p7  ;;  %p1978_p4 = scmp.lt.s32.totalorder %s1976_s20, %s1969_s13 }
  0x1c   : > { %p1973_p2 = pneg %p1972_p1  ;;  %p1979_p6 = por %p1978_p4, %p1977_p3 }
  0x1e   : > { %p1980_p8 = pnand %p1979_p6, %p1973_p2 }
  0x20   : > { %1983 = shalt.err (!%p1980_p8)
}
  0x21   : > { %1882 = dma.hbm_to_vmem [thread:$0]  (!%p2188_p5), %s2185_s19, 128, %s284_s21, %s2192_s23  }
  0x22   : > { %s2216_s24 = sadd.s32 4294967295, %s2080_s30   ;;  %p42_p10 = scmp.ne.s32.totalorder %s2072_s28, %s2068_s27 }
  0x23   : > { %p2537_p9 = scmp.eq.s32.totalorder %s2216_s24, 0  ;;  %p1727_p11 = scmp.ge.s32.totalorder %s2080_s30, 1 }
  0x24   : > { %p231_p12 = scmp.lt.s32.totalorder %s2080_s30, 3  ;;  %s2083_s19 = smov [#allocation4]  }
  0x25   : > { %p2225_p13 = por %p2537_p9, %p42_p10  ;;  %s249_s21 = sshll.u32 %s2083_s19, 4  ;;  %s2240_s21 = int_to_ptr.vmem [resolvable:$true] %s249_s21 }
  0x26   : > { %p2229_p0 = pnand %p1727_p11, %p231_p12  ;;  %s2238_s27 = scalar_lea.hbm %s2533_s5, %s1731_s16 }
  0x27   : > { %s2542_s25 = scalar_select %p2225_p13, 1, 0 }
  0x28   : > { %s2543_s26 = scalar_select %p2229_p0, 1, 0 }
  0x29   : > { %p1875_p1 = pneg %p2229_p0  ;;  %s294_s14 = scalar_lea.vmem [#allocation6], %s2177_s15 }
  0x2a   : > { %s301_s13 = sshll.u32 %s294_s14, 4  ;;  %s1984_s30 = scalar_lea.hbm %s2238_s27, 128  ;;  %s302_s13 = int_to_ptr.vmem [resolvable:$true] %s301_s13 }
  0x2b   : > { %p2247_p2 = pnand %p1875_p1, %p2537_p9  ;;  %p1985_p3 = scmp.ne.s32.totalorder %s2238_s27, %s1984_s30 }
  0x2c   : > { %s1989_s20 = scalar_lea.hbm %s2533_s5, 256  ;;  %p1990_p8 = scmp.lt.s32.totalorder %s2238_s27, %s2533_s5 }
  0x2d   : > { %s2544_s17 = scalar_select %p2247_p2, 1, 0 }
  0x2e   : > { %p1987_p4 = pnand %p1985_p3, %p1958_p7  ;;  %p1991_p10 = scmp.lt.s32.totalorder %s1989_s20, %s1984_s30 }
  0x30   : > { %p1988_p6 = pneg %p1987_p4  ;;  %p1992_p11 = por %p1991_p10, %p1990_p8 }
  0x32   : > { %p1993_p12 = pnand %p1992_p11, %p1988_p6 }
  0x34   : > { %1996 = shalt.err (!%p1993_p12)
}
  0x35   : > { %s1997_s15 = scalar_lea.vmem %s302_s13, 128  ;;  %s2084_s11 = smov [#allocation6]  }
  0x36   : > { %p1998_p1 = scmp.ne.s32.totalorder %s302_s13, %s1997_s15  ;;  %s2002_s14 = sshll.u32 %s2084_s11, 4  ;;  %s2003_s14 = int_to_ptr.vmem [resolvable:$false] %s2002_s14 }
  0x37   : > { %s2004_s16 = scalar_lea.vmem %s2003_s14, 256  ;;  %p2005_p4 = scmp.lt.s32.totalorder %s302_s13, %s2003_s14 }
  0x38   : > { %p2000_p9 = pnand %p1998_p1, %p1958_p7  ;;  %p2006_p13 = scmp.lt.s32.totalorder %s2004_s16, %s1997_s15 }
  0x3a   : > { %p2001_p3 = pneg %p2000_p9  ;;  %p2007_p0 = por %p2006_p13, %p2005_p4 }
  0x3c   : > { %p2008_p2 = pnand %p2007_p0, %p2001_p3 }
  0x3e   : > { %2011 = shalt.err (!%p2008_p2)
}
  0x3f   : > { %1885 = dma.hbm_to_vmem [thread:$0]  (!%p2188_p5), %s2238_s27, 128, %s302_s13, %s2192_s23  }
  0x40   : > { %p2545_p7 = scmp.ne.s32.totalorder %s2544_s17, 0  ;;  %s2023_s30 = scalar_lea.vmem %s2240_s21, 256 }
  0x41   : > { %p2024_p6 = scmp.ne.s32.totalorder %s2240_s21, %s2023_s30  ;;  %p2031_p11 = scmp.lt.s32.totalorder %s2240_s21, %s2240_s21 }
  0x42   : > { %p2014_p9 = pneg %p2545_p7  ;;  %p2032_p13 = scmp.lt.s32.totalorder %s2023_s30, %s2023_s30 }
  0x44   : > { %p2026_p8 = pnand %p2024_p6, %p2014_p9  ;;  %p2033_p0 = por %p2032_p13, %p2031_p11 }
  0x46   : > { %p2027_p10 = pneg %p2026_p8 }
  0x48   : > { %p2034_p2 = pnand %p2033_p0, %p2027_p10 }
  0x4a   : > { %2037 = shalt.err (!%p2034_p2)
}
  0x4b   : > { %s2085_s22 = smov 64   ;;  %s2086_s18 = smov 4  }
  0x4c   : > { %1878 = dma.hbm_to_vmem [thread:$0]  (!%p2545_p7), %s2531_s3, 256, %s2240_s21, [#allocation5], %s2085_s22, %s2085_s22, %s2086_s18  }
  0x4d   : > { %p2546_p5 = scmp.ne.s32.totalorder %s2543_s26, 0 }
  0x4e   : > { %s312_s23 = sand.u32 (!%p2546_p5), 1, %s2216_s24   ;;  %s314_s27 = sand.u32 (!%p2546_p5), 1, %s2072_s28  }
  0x4f   : > { %310 = sbr.rel (%p2546_p5) target bundleno = 1851 (0x73b), region = 52  ;;  %s2286_s13 = sshll.u32 (!%p2546_p5), %s314_s27, 3 }
  0x50   : > { %s313_s10 = scalar_lea.sflag (!%p2546_p5), [#allocation3], %s312_s23  ;;  %s316_s15 = scalar_lea.vmem (!%p2546_p5), [#allocation2], %s2286_s13 }
  0x51   : > { %p2547_p12 = scmp.ne.s32.totalorder (!%p2546_p5), %s2542_s25, 0 }
  0x54   : > { %2055 = dma.done.wait (%p2547_p12), %s313_s10, 128  }
  0x55   : > { %2057 = vsyncadd (%p2547_p12), %s313_s10, 4294967168  ;;  %p2548_p1 = scmp.eq.s32.totalorder %s2216_s24, 0 }
  0x57   : > { %2059 = dma.done.wait (%p2548_p1), [#allocation5], 256   ;;  %p2549_p3 = pmov %p2548_p1 }
  0x58   : > { %s329_s26 = scalar_lea.vmem [#allocation6], %s2286_s13 }
  0x59   : > { %2061 = vsyncadd (%p2549_p3), [#allocation5], 4294967040 }
  0x5a   : > { %2063 = dma.done.wait (%p2547_p12), %s313_s10, 128  }
  0x5b   : > { %2065 = vsyncadd (%p2547_p12), %s313_s10, 4294967168  ;;  %v2087_v0 = vmov 0.0   ;;  %vm2088_vm0 = vmmov 0   ;;  %v1934_v1 = vld [vmem:[%s2529_s1 + $0x8] sm:$0xff]   ;;  %v1935_v2 = vld [vmem:[%s2529_s1] sm:$0xff]   ;;  %vm396_vm1 = vcmask 261120   ;;  %v452_v19 = vlaneseq }
  0x5c   : > { %1787 = vmatprep.subr.bf16.mxu0 %v2087_v0  ;;  %1791 = vmatprep.mubr.msk.bf16.mxu0 %vm2088_vm0, %v2087_v0  ;;  %v2314_v3 = vld [vmem:[%s316_s15] sm:$0xff]  ;;  %s2089_s30 = smov 104   ;;  %s2090_s22 = smov 120   ;;  %v2093_v17 = vmov 1983009808   ;;  %v2095_v48 = vmov 0  }
  0x5d   : > { %1795 = vmatprep.subr.bf16.mxu1 %v2087_v0  ;;  %1797 = vmatprep.mubr.msk.bf16.mxu1 %vm2088_vm0, %v2087_v0  ;;  %v372_v4 = vpack.c.bf16 %v2314_v3, %v2314_v3  ;;  %v1739_v5 = vld [vmem:[%s2530_s2] ss:$0 sm:$0xff]  ;;  %s2091_s18 = smov 96   ;;  %s2092_s20 = smov 112   ;;  %v450_v18 = vunpack.c.l.s4 %v2093_v17  ;;  %v2094_v20 = vmov 1934713408  }
  0x5e   : > { %1788 = vmatpush3.bf16.msra.mxu0 %v1934_v1  ;;  %v467_v21 = vunpack.c.l.s4 %v2094_v20  ;;  %v453_v23 = vshrl.u32 %v452_v19, 7  ;;  %vm964_vm2 = vcmask 64512   ;;  %s2096_s19 = smov 64   ;;  %vm1207_vm4 = vcmask 1043456   ;;  %p366_p4 = scmp.lt.s32.totalorder %s2216_s24, 1 }
  0x5f   : > { %1789 = vmatprep.subr.bf16.mxu0 %v2087_v0  ;;  %v451_v22 = vunpack.c.0.s8 %v450_v18 }
  0x60   : > { %v468_v26 = vunpack.c.0.s8 %v467_v21  ;;  %s2555_s24 = smov (!%p366_p4, %s2216_s24), 1 }
  0x61   : > { %v2341_v27 = vsub.s32 %v451_v22, %v453_v23  ;;  %s1738_s15 = sshll.u32 %s2555_s24, 3 }
  0x62   : > { %1790 = vmatpush3.bf16.msra.mxu0 %v1935_v2  ;;  %v2343_v28 = vsub.s32 %v468_v26, %v453_v23  ;;  %s369_s25 = scalar_lea.vmem %s2536_s8, %s1738_s15 }
  0x63   : > { %1801 = vmatprep.subr.bf16.mxu0 %v2087_v0 }
  0x65   : > { %1792 = vmatmul.mubr.msk.bf16.vlgmr.msra.gmra.mxu0 %vm396_vm1, %v372_v4 }
  0x66   : > { %1803 = vmatprep.mubr.msk.bf16.mxu0 %vm2088_vm0, %v2087_v0 }
 0x125   : > { %v434_v6 = vpop.f32.mrf.mxu0 }
 0x126   : > { %v435_v7 = vadd.f32 %v1739_v5, %v434_v6 }
 0x127   : > { %v1793_v8 = vpop.f32.mrf.mxu0 }
 0x128   : > { %v2326_v9 = vpack.c.bf16 %v435_v7, %v435_v7  ;;  %v440_v13 = vmul.f32 0.35355338, %v435_v7 }
 0x129   : > { %v437_v10 = vpop.f32.mrf.mxu0 }
 0x12a   : > { %616 = vrot.lane.b32.xlu1 %v2326_v9, %s2089_s30  ;;  %612 = vrot.lane.b32.xlu0 %v2326_v9, %s2090_s22  ;;  %v441_v16 = vpack.c.bf16 %v440_v13, %v440_v13 }
 0x12b   : > { %v1794_v11 = vpop.f32.mrf.mxu0 }
 0x12c   : > { %v455_v45 = vrot.slane %v441_v16, %v2341_v27 }
 0x12e   : > { %618 = vrot.lane.b32.xlu1 %v2326_v9, %s2091_s18  ;;  %614 = vrot.lane.b32.xlu0 %v2326_v9, %s2092_s20 }
 0x19c   : > { %v2332_v12 = vpop.permute.xlu0 %612  ;;  %v2335_v14 = vpop.permute.xlu1 %616 }
 0x19d   : > { %620 = vrot.lane.b32.xlu0 %v2332_v12, %s2091_s18 }
 0x1a0   : > { %v2337_v15 = vpop.permute.xlu0 %614  ;;  %v619_v24 = vpop.permute.xlu1 %618 }
 0x1a1   : > { %624 = vrot.lane.b32.xlu0 %v2335_v14, %s2091_s18  ;;  %622 = vrot.lane.b32.xlu1 %v2337_v15, %s2091_s18  ;;  %v633_v31 = vrot.slane %v619_v24, %v2341_v27 }
 0x1a5   : > { %445 = vrot.lane.b32.xlu0 %v441_v16, %s2092_s20  ;;  %443 = vrot.lane.b32.xlu1 %v441_v16, %s2090_s22 }
 0x1a9   : > { %447 = vrot.lane.b32.xlu1 %v441_v16, %s2089_s30 }
 0x20f   : > { %v621_v25 = vpop.permute.xlu0 %620 }
 0x210   : > { %v667_v32 = vrot.slane %v621_v25, %v2341_v27 }
 0x213   : > { %v623_v29 = vpop.permute.xlu1 %622  ;;  %v625_v30 = vpop.permute.xlu0 %624 }
 0x214   : > { %v641_v33 = vrot.slane %v623_v29, %v2341_v27  ;;  %v675_v34 = vrot.slane %v625_v30, %v2341_v27 }
 0x216   : > { %v642_v35 = vcombine.low %v633_v31, %v641_v33  ;;  %v643_v36 = vcombine.high %v633_v31, %v641_v33  ;;  %v676_v37 = vcombine.low %v667_v32, %v675_v34  ;;  %v677_v38 = vcombine.high %v667_v32, %v675_v34 }
 0x217   : > { %v446_v39 = vpop.permute.xlu0 %445  ;;  %v444_v40 = vpop.permute.xlu1 %443 }
 0x218   : > { %v650_v41 = vrot.slane %v642_v35, %v2343_v28  ;;  %v657_v42 = vrot.slane %v643_v36, %v2343_v28  ;;  %v684_v43 = vrot.slane %v676_v37, %v2343_v28  ;;  %v691_v44 = vrot.slane %v677_v38, %v2343_v28 }
 0x219   : > { %v463_v46 = vrot.slane %v446_v39, %v2341_v27  ;;  %v489_v47 = vrot.slane %v444_v40, %v2341_v27 }
 0x21a   : > { %v658_v49 = vcombine.high %v650_v41, %v2095_v48  ;;  %v659_v50 = vcombine.high %v657_v42, %v2095_v48  ;;  %v698_v51 = vshrl.u32 %v650_v41, 16  ;;  %v714_v52 = vshrl.u32 %v657_v42, 16 }
 0x21b   : > { %v692_v53 = vcombine.high %v684_v43, %v2095_v48  ;;  %v693_v54 = vcombine.high %v691_v44, %v2095_v48  ;;  %v696_v55 = vpack.i.b16 %v684_v43, %v650_v41  ;;  %v699_v56 = vshrl.u32 %v684_v43, 16  ;;  %v448_v61 = vpop.permute.xlu1 %447 }
 0x21c   : > { %v706_v57 = vshrl.u32 %v658_v49, 16  ;;  %v722_v58 = vshrl.u32 %v659_v50, 16  ;;  %v712_v59 = vpack.i.b16 %v691_v44, %v657_v42  ;;  %v715_v60 = vshrl.u32 %v691_v44, 16 }
 0x21d   : > { %v700_v62 = vpack.i.b16 %v699_v56, %v698_v51  ;;  %v704_v63 = vpack.i.b16 %v692_v53, %v658_v49  ;;  %v707_v1 = vshrl.u32 %v692_v53, 16  ;;  %v720_v2 = vpack.i.b16 %v693_v54, %v659_v50 }
 0x21e   : > { %v716_v4 = vpack.i.b16 %v715_v60, %v714_v52  ;;  %v723_v5 = vshrl.u32 %v693_v54, 16  ;;  %v726_v6 = vcombine.low %v696_v55, %v712_v59  ;;  %v464_v7 = vcombine.low %v455_v45, %v463_v46 }
 0x21f   : > { %v708_v8 = vpack.i.b16 %v707_v1, %v706_v57  ;;  %v465_v10 = vcombine.high %v455_v45, %v463_v46  ;;  %v497_v11 = vrot.slane %v448_v61, %v2341_v27  ;;  %v734_v13 = vcombine.low %v704_v63, %v720_v2 }
 0x220   : > { %v724_v16 = vpack.i.b16 %v723_v5, %v722_v58  ;;  %v472_v17 = vrot.slane %v464_v7, %v2343_v28  ;;  %v751_v18 = vcombine.low %v700_v62, %v716_v4  ;;  %v733_v25 = vrot.slane %v726_v6, %v2341_v27 }
 0x221   : > { %v479_v19 = vrot.slane %v465_v10, %v2343_v28  ;;  %v498_v20 = vcombine.low %v489_v47, %v497_v11  ;;  %v499_v21 = vcombine.high %v489_v47, %v497_v11  ;;  %v741_v22 = vrot.slane %v734_v13, %v2341_v27 }
 0x222   : > { %v480_v23 = vcombine.high %v472_v17, %v2095_v48  ;;  %v520_v24 = vshrl.u32 %v472_v17, 16  ;;  %v759_v26 = vcombine.low %v708_v8, %v724_v16  ;;  %v758_v32 = vrot.slane %v751_v18, %v2341_v27 }
 0x223   : > { %v481_v29 = vcombine.high %v479_v19, %v2095_v48  ;;  %v506_v30 = vrot.slane %v498_v20, %v2343_v28  ;;  %v513_v31 = vrot.slane %v499_v21, %v2343_v28  ;;  %v536_v34 = vshrl.u32 %v479_v19, 16 }
 0x224   : > { %v528_v33 = vshrl.u32 %v480_v23, 16  ;;  %v742_v35 = vcombine.low %v733_v25, %v741_v22  ;;  %v766_v36 = vrot.slane %v759_v26, %v2341_v27 }
 0x225   : > { %v544_v37 = vshrl.u32 %v481_v29, 16  ;;  %v514_v38 = vcombine.high %v506_v30, %v2095_v48  ;;  %v515_v39 = vcombine.high %v513_v31, %v2095_v48  ;;  %v518_v40 = vpack.i.b16 %v506_v30, %v472_v17 }
 0x226   : > { %v521_v41 = vshrl.u32 %v506_v30, 16  ;;  %v534_v42 = vpack.i.b16 %v513_v31, %v479_v19  ;;  %v537_v43 = vshrl.u32 %v513_v31, 16  ;;  %v749_v44 = vrot.slane %v742_v35, %v2343_v28 }
 0x227   : > { %v526_v45 = vpack.i.b16 %v514_v38, %v480_v23  ;;  %v529_v46 = vshrl.u32 %v514_v38, 16  ;;  %v542_v47 = vpack.i.b16 %v515_v39, %v481_v29  ;;  %v545_v49 = vshrl.u32 %v515_v39, 16 }
 0x228   : > { %v522_v50 = vpack.i.b16 %v521_v41, %v520_v24  ;;  %v538_v51 = vpack.i.b16 %v537_v43, %v536_v34  ;;  %v548_v52 = vcombine.low %v518_v40, %v534_v42  ;;  %v767_v53 = vcombine.low %v758_v32, %v766_v36  ;;  %v958_v36 = vld [vmem:[%s329_s26] sm:$0xff] }
 0x229   : > { %v530_v54 = vpack.i.b16 %v529_v46, %v528_v33  ;;  %v546_v55 = vpack.i.b16 %v545_v49, %v544_v37  ;;  %v556_v56 = vcombine.low %v526_v45, %v542_v47  ;;  %v779_v63 = vshrl.u32 %v749_v44, 16 }
 0x22a   : > { %v573_v57 = vcombine.low %v522_v50, %v538_v51  ;;  %v774_v58 = vrot.slane %v767_v53, %v2343_v28  ;;  %v555_v59 = vrot.slane %v548_v52, %v2341_v27  ;;  %v750_v10 = vcombine.high %v749_v44, %v2095_v48 }
 0x22b   : > { %v563_v60 = vrot.slane %v556_v56, %v2341_v27  ;;  %v581_v61 = vcombine.low %v530_v54, %v546_v55  ;;  %vm1149_vm3 = vcmp.lt.f32.partialorder %v958_v36, 0.5 }
 0x22c   : > { %v778_v62 = vpack.i.b16 %v774_v58, %v749_v44  ;;  %v780_v1 = vshrl.u32 %v774_v58, 16  ;;  %v775_v2 = vcombine.high %v774_v58, %v2095_v48  ;;  %v580_v4 = vrot.slane %v573_v57, %v2341_v27 }
 0x22d   : > { %v564_v5 = vcombine.low %v555_v59, %v563_v60  ;;  %v588_v6 = vrot.slane %v581_v61, %v2341_v27  ;;  %v785_v20 = vshrl.u32 %v750_v10, 16 }
 0x22e   : > { %v969_v7 = vsel %vm964_vm2, %v778_v62, 0  ;;  %v781_v8 = vpack.i.b16 %v780_v1, %v779_v63  ;;  %v786_v17 = vshrl.u32 %v775_v2, 16  ;;  %v784_v19 = vpack.i.b16 %v775_v2, %v750_v10 }
 0x22f   : > { %1796 = vmatpush3.bf16.xpose.msra.mxu1 %v969_v7  ;;  %v571_v11 = vrot.slane %v564_v5, %v2343_v28  ;;  %v589_v13 = vcombine.low %v580_v4, %v588_v6 }
 0x230   : > { %v1015_v16 = vsel %vm964_vm2, %v781_v8, 0  ;;  %1807 = vmatprep.subr.bf16.mxu1 %v2087_v0  ;;  %v787_v24 = vpack.i.b16 %v786_v17, %v785_v20  ;;  %v1061_v26 = vsel %vm964_vm2, %v784_v19, 0 }
 0x231   : > { %1802 = vmatpush3.bf16.xpose.msra.mxu0 %v1015_v16  ;;  %v596_v18 = vrot.slane %v589_v13, %v2343_v28  ;;  %v601_v22 = vshrl.u32 %v571_v11, 16  ;;  %v572_v31 = vcombine.high %v571_v11, %v2095_v48 }
 0x232   : > { %1813 = vmatprep.subr.bf16.mxu0 %v2087_v0  ;;  %v1107_v30 = vsel %vm964_vm2, %v787_v24, 0 }
 0x233   : > { %v600_v21 = vpack.i.b16 %v596_v18, %v571_v11  ;;  %v602_v23 = vshrl.u32 %v596_v18, 16  ;;  %v597_v29 = vcombine.high %v596_v18, %v2095_v48  ;;  %v607_v34 = vshrl.u32 %v572_v31, 16 }
 0x235   : > { %v603_v25 = vpack.i.b16 %v602_v23, %v601_v22  ;;  %v608_v32 = vshrl.u32 %v597_v29, 16  ;;  %v606_v33 = vpack.i.b16 %v597_v29, %v572_v31 }
 0x236   : > { %1798 = vmatmul.mubr.msk.bf16.vlgmr.msra.gmra.mxu1 %vm964_vm2, %v600_v21 }
 0x237   : > { %1808 = vmatpush3.bf16.xpose.msra.mxu1 %v1061_v26  ;;  %1809 = vmatprep.mubr.msk.bf16.mxu1 %vm2088_vm0, %v2087_v0  ;;  %v609_v35 = vpack.i.b16 %v608_v32, %v607_v34 }
 0x238   : > { %1804 = vmatmul.mubr.msk.bf16.vlgmr.msra.gmra.mxu0 %vm964_vm2, %v603_v25  ;;  %1819 = vmatprep.subr.bf16.mxu1 %v2087_v0 }
 0x239   : > { %1814 = vmatpush3.bf16.xpose.msra.mxu0 %v1107_v30  ;;  %1815 = vmatprep.mubr.msk.bf16.mxu0 %vm2088_vm0, %v2087_v0 }
 0x23a   : > { %1825 = vmatprep.subr.bf16.mxu0 %v2087_v0 }
 0x23e   : > { %1810 = vmatmul.mubr.msk.bf16.vlgmr.msra.gmra.mxu1 %vm964_vm2, %v606_v33 }
 0x23f   : > { %1821 = vmatprep.mubr.msk.bf16.mxu1 %vm2088_vm0, %v2087_v0 }
 0x240   : > { %1816 = vmatmul.mubr.msk.bf16.vlgmr.msra.gmra.mxu0 %vm964_vm2, %v609_v35 }
 0x241   : > { %1827 = vmatprep.mubr.msk.bf16.mxu0 %vm2088_vm0, %v2087_v0 }
 0x2f6   : > { %v1005_v37 = vpop.f32.mrf.mxu1 }
 0x2f7   : > { %v1152_v38 = vsel %vm1149_vm3, -1e+09, %v1005_v37 }
 0x2f8   : > { %v1799_v39 = vpop.f32.mrf.mxu1  ;;  %v1051_v40 = vpop.f32.mrf.mxu0  ;;  %v1156_v41 = vsel %vm964_vm2, %v1152_v38, -inf }
 0x2f9   : > { %v1153_v42 = vsel %vm1149_vm3, -1e+09, %v1051_v40  ;;  %1157 = vmax.xlane.f32.xlu0 %v1156_v41 }
 0x2fa   : > { %v1008_v43 = vpop.f32.mrf.mxu1  ;;  %v1805_v44 = vpop.f32.mrf.mxu0  ;;  %v1159_v45 = vsel %vm964_vm2, %v1153_v42, -inf }
 0x2fb   : > { %1160 = vmax.xlane.f32.xlu1 %v1159_v45 }
 0x2fc   : > { %v1800_v46 = vpop.f32.mrf.mxu1  ;;  %v1054_v47 = vpop.f32.mrf.mxu0 }
 0x2fe   : > { %v1806_v49 = vpop.f32.mrf.mxu0  ;;  %v1097_v50 = vpop.f32.mrf.mxu1 }
 0x2ff   : > { %v1154_v51 = vsel %vm1149_vm3, -1e+09, %v1097_v50 }
 0x300   : > { %v1811_v52 = vpop.f32.mrf.mxu1  ;;  %v1143_v53 = vpop.f32.mrf.mxu0  ;;  %v1162_v54 = vsel %vm964_vm2, %v1154_v51, -inf }
 0x301   : > { %v1155_v55 = vsel %vm1149_vm3, -1e+09, %v1143_v53  ;;  %1163 = vmax.xlane.f32.xlu0 %v1162_v54 }
 0x302   : > { %v1100_v56 = vpop.f32.mrf.mxu1  ;;  %v1817_v57 = vpop.f32.mrf.mxu0  ;;  %v1165_v60 = vsel %vm964_vm2, %v1155_v55, -inf }
 0x304   : > { %v1812_v58 = vpop.f32.mrf.mxu1  ;;  %v1146_v59 = vpop.f32.mrf.mxu0 }
 0x305   : > { %1166 = vmax.xlane.f32.xlu0 %v1165_v60 }
 0x306   : > { %v1818_v61 = vpop.f32.mrf.mxu0 }
 0x30c   : > { %788 = vrot.lane.b32.xlu1 %v2326_v9, %s2096_s19 }
 0x382   : > { %v1158_v62 = vpop.xlane.xlu0 %1157 }
 0x383   : > { %v1168_v63 = vsub.f32 %v1152_v38, %v1158_v62 }
 0x384   : > { %v1161_v1 = vpop.xlane.xlu1 %1160 }
 0x385   : > { %v1172_v2 = vmul.f32 1.442695, %v1168_v63  ;;  %v1169_v4 = vsub.f32 %v1153_v42, %v1161_v1 }
 0x387   : > { %1936 = vpow2.f32 %v1172_v2  ;;  %v1174_v5 = vmul.f32 1.442695, %v1169_v4 }
 0x389   : > { %1938 = vpow2.f32 %v1174_v5 }
 0x38a   : > { %v1164_v9 = vpop.xlane.xlu0 %1163 }
 0x38b   : > { %v1170_v13 = vsub.f32 %v1154_v51, %v1164_v9 }
 0x38d   : > { %v1176_v17 = vmul.f32 1.442695, %v1170_v13 }
 0x38e   : > { %v1167_v11 = vpop.xlane.xlu0 %1166 }
 0x38f   : > { %v1171_v16 = vsub.f32 %v1155_v55, %v1167_v11  ;;  %1940 = vpow2.f32 %v1176_v17 }
 0x391   : > { %v1178_v18 = vmul.f32 1.442695, %v1171_v16 }
 0x393   : > { %1942 = vpow2.f32 %v1178_v18 }
 0x394   : > { %v2416_v6 = vpop.eup %1936 }
 0x395   : > { %v1180_v7 = vsel %vm964_vm2, %v2416_v6, 0.0 }
 0x396   : > { %v2420_v8 = vpop.eup %1938  ;;  %1181 = vadd.xlane.f32.xlu1 %v1180_v7 }
 0x397   : > { %v1183_v10 = vsel %vm964_vm2, %v2420_v8, 0.0 }
 0x398   : > { %1184 = vadd.xlane.f32.xlu0 %v1183_v10 }
 0x39c   : > { %v2427_v19 = vpop.eup %1940 }
 0x39d   : > { %v1186_v21 = vsel %vm964_vm2, %v2427_v19, 0.0 }
 0x3a0   : > { %v2429_v20 = vpop.eup %1942 }
 0x3a7   : > { %792 = vrot.lane.b32.xlu1 %v2337_v15, %s2096_s19 }
 0x3ab   : > { %794 = vrot.lane.b32.xlu1 %v2335_v14, %s2096_s19  ;;  %v1189_v14 = vsel %vm964_vm2, %v2429_v20, 0.0 }
 0x3ae   : > { %790 = vrot.lane.b32.xlu0 %v2332_v12, %s2096_s19  ;;  %v789_v12 = vpop.permute.xlu1 %788 }
 0x3af   : > { %v803_v24 = vrot.slane %v789_v12, %v2341_v27 }
 0x3cd   : > { %1187 = vadd.xlane.f32.xlu0 %v1186_v21 }
 0x3cf   : > { %1190 = vadd.xlane.f32.xlu1 %v1189_v14 }
 0x41f   : > { %v1182_v15 = vpop.xlane.xlu1 %1181 }
 0x420   : > { %1944 = vrcp.f32 %v1182_v15 }
 0x421   : > { %v1185_v22 = vpop.xlane.xlu0 %1184 }
 0x422   : > { %1946 = vrcp.f32 %v1185_v22 }
 0x423   : > { %v793_v23 = vpop.permute.xlu1 %792 }
 0x424   : > { %v811_v25 = vrot.slane %v793_v23, %v2341_v27 }
 0x425   : > { %v791_v30 = vpop.permute.xlu0 %790 }
 0x426   : > { %v812_v26 = vcombine.low %v803_v24, %v811_v25  ;;  %v813_v29 = vcombine.high %v803_v24, %v811_v25  ;;  %v837_v34 = vrot.slane %v791_v30, %v2341_v27 }
 0x427   : > { %v795_v31 = vpop.permute.xlu1 %794 }
 0x428   : > { %v820_v32 = vrot.slane %v812_v26, %v2343_v28  ;;  %v845_v33 = vrot.slane %v795_v31, %v2341_v27  ;;  %v827_v35 = vrot.slane %v813_v29, %v2343_v28 }
 0x42a   : > { %v846_v36 = vcombine.low %v837_v34, %v845_v33  ;;  %v847_v37 = vcombine.high %v837_v34, %v845_v33  ;;  %v828_v38 = vcombine.high %v820_v32, %v2095_v48  ;;  %v829_v41 = vcombine.high %v827_v35, %v2095_v48 }
 0x42b   : > { %v868_v42 = vshrl.u32 %v820_v32, 16  ;;  %v884_v49 = vshrl.u32 %v827_v35, 16 }
 0x42c   : > { %v854_v39 = vrot.slane %v846_v36, %v2343_v28  ;;  %v861_v40 = vrot.slane %v847_v37, %v2343_v28  ;;  %v876_v47 = vshrl.u32 %v828_v38, 16  ;;  %v892_v56 = vshrl.u32 %v829_v41, 16 }
 0x42d   : > { %v1945_v11 = vpop.eup %1944 }
 0x42e   : > { %v862_v43 = vcombine.high %v854_v39, %v2095_v48  ;;  %v863_v44 = vcombine.high %v861_v40, %v2095_v48  ;;  %v866_v45 = vpack.i.b16 %v854_v39, %v820_v32  ;;  %v869_v46 = vshrl.u32 %v854_v39, 16 }
 0x42f   : > { %v882_v50 = vpack.i.b16 %v861_v40, %v827_v35  ;;  %v885_v51 = vshrl.u32 %v861_v40, 16  ;;  %v1947_v16 = vpop.eup %1946  ;;  %v1196_v21 = vmul.f32 %v1945_v11, %v2416_v6  ;;  %v959_v40 = vld [vmem:[#allocation4] sm:$0xf] }
 0x430   : > { %v870_v52 = vpack.i.b16 %v869_v46, %v868_v42  ;;  %v874_v53 = vpack.i.b16 %v862_v43, %v828_v38  ;;  %v877_v54 = vshrl.u32 %v862_v43, 16  ;;  %v890_v55 = vpack.i.b16 %v863_v44, %v829_v41 }
 0x431   : > { %v886_v57 = vpack.i.b16 %v885_v51, %v884_v49  ;;  %v893_v58 = vshrl.u32 %v863_v44, 16  ;;  %v896_v59 = vcombine.low %v866_v45, %v882_v50  ;;  %v1197_v23 = vmul.f32 %v1947_v16, %v2420_v8  ;;  %v962_v44 = vld [vmem:[#allocation4 + $0xc] sm:$0xf] }
 0x432   : > { %v878_v60 = vpack.i.b16 %v877_v54, %v876_v47  ;;  %v904_v61 = vcombine.low %v874_v53, %v890_v55  ;;  %v1397_v41 = vsel %vm1207_vm4, %v959_v40, 0  ;;  %v1535_v51 = vsel %vm1207_vm4, %v962_v44, 0 }
 0x433   : > { %v894_v62 = vpack.i.b16 %v893_v58, %v892_v56  ;;  %v921_v63 = vcombine.low %v870_v52, %v886_v57  ;;  %v903_v1 = vrot.slane %v896_v59, %v2341_v27  ;;  %v1201_v31 = vpack.c.bf16 %v1197_v23, %v1197_v23 }
 0x434   : > { %v911_v2 = vrot.slane %v904_v61, %v2341_v27 }
 0x435   : > { %v929_v4 = vcombine.low %v878_v60, %v894_v62  ;;  %v928_v7 = vrot.slane %v921_v63, %v2341_v27 }
 0x436   : > { %v912_v5 = vcombine.low %v903_v1, %v911_v2 }
 0x437   : > { %v936_v10 = vrot.slane %v929_v4, %v2341_v27 }
 0x438   : > { %v919_v9 = vrot.slane %v912_v5, %v2343_v28 }
 0x439   : > { %v937_v13 = vcombine.low %v928_v7, %v936_v10 }
 0x43a   : > { %v920_v17 = vcombine.high %v919_v9, %v2095_v48  ;;  %v949_v12 = vshrl.u32 %v919_v9, 16 }
 0x43b   : > { %v944_v18 = vrot.slane %v937_v13, %v2343_v28  ;;  %v1200_v28 = vpack.c.bf16 %v1196_v21, %v1196_v21 }
 0x43c   : > { %v955_v27 = vshrl.u32 %v920_v17, 16 }
 0x43d   : > { %v948_v14 = vpack.i.b16 %v944_v18, %v919_v9  ;;  %v950_v15 = vshrl.u32 %v944_v18, 16  ;;  %v945_v22 = vcombine.high %v944_v18, %v2095_v48 }
 0x43f   : > { %v1209_v24 = vsel %vm1207_vm4, %v948_v14, 0  ;;  %v951_v25 = vpack.i.b16 %v950_v15, %v949_v12  ;;  %v954_v26 = vpack.i.b16 %v945_v22, %v920_v17  ;;  %v956_v29 = vshrl.u32 %v945_v22, 16 }
 0x440   : > { %1820 = vmatpush3.bf16.msra.mxu1 %v1209_v24 }
 0x441   : > { %v1255_v30 = vsel %vm1207_vm4, %v951_v25, 0  ;;  %1831 = vmatprep.subr.bf16.mxu1 %v2087_v0  ;;  %v957_v6 = vpack.i.b16 %v956_v29, %v955_v27  ;;  %v1301_v48 = vsel %vm1207_vm4, %v954_v26, 0  ;;  %v1755_v27 = vld [vmem:[%s2532_s4] ss:$0 sm:$0xff] }
 0x442   : > { %1826 = vmatpush3.bf16.msra.mxu0 %v1255_v30 }
 0x443   : > { %1822 = vmatmul.mubr.msk.bf16.vlgmr.msra.gmra.mxu1 %vm964_vm2, %v1200_v28  ;;  %1837 = vmatprep.subr.bf16.mxu0 %v2087_v0  ;;  %v1347_v8 = vsel %vm1207_vm4, %v957_v6, 0 }
 0x444   : > { %1832 = vmatpush3.bf16.msra.mxu1 %v1301_v48  ;;  %1833 = vmatprep.mubr.msk.bf16.mxu1 %vm2088_vm0, %v2087_v0 }
 0x445   : > { %1828 = vmatmul.mubr.msk.bf16.vlgmr.msra.gmra.mxu0 %vm964_vm2, %v1201_v31  ;;  %1843 = vmatprep.subr.bf16.mxu1 %v2087_v0 }
 0x446   : > { %1838 = vmatpush3.bf16.msra.mxu0 %v1347_v8  ;;  %1839 = vmatprep.mubr.msk.bf16.mxu0 %vm2088_vm0, %v2087_v0 }
 0x447   : > { %1849 = vmatprep.subr.bf16.mxu0 %v2087_v0 }
 0x456   : > { %v1188_v32 = vpop.xlane.xlu0 %1187 }
 0x457   : > { %1948 = vrcp.f32 %v1188_v32 }
 0x458   : > { %v1191_v33 = vpop.xlane.xlu1 %1190 }
 0x459   : > { %1950 = vrcp.f32 %v1191_v33 }
 0x464   : > { %v1949_v34 = vpop.eup %1948 }
 0x465   : > { %v1198_v35 = vmul.f32 %v1949_v34, %v2427_v19  ;;  %v960_v19 = vld [vmem:[#allocation4 + $0x4] sm:$0xf] }
 0x466   : > { %v1951_v36 = vpop.eup %1950  ;;  %v1443_v42 = vsel %vm1207_vm4, %v960_v19, 0 }
 0x467   : > { %v1202_v37 = vpack.c.bf16 %v1198_v35, %v1198_v35  ;;  %v1199_v38 = vmul.f32 %v1951_v36, %v2429_v20  ;;  %v961_v20 = vld [vmem:[#allocation4 + $0x8] sm:$0xf] }
 0x468   : > { %v1489_v46 = vsel %vm1207_vm4, %v961_v20, 0  ;;  %v1756_v20 = vld [vmem:[%s2534_s6] ss:$0 sm:$0xff] }
 0x469   : > { %1834 = vmatmul.mubr.msk.bf16.vlgmr.msra.gmra.mxu1 %vm964_vm2, %v1202_v37  ;;  %v1203_v39 = vpack.c.bf16 %v1199_v38, %v1199_v38 }
 0x46a   : > { %1845 = vmatprep.mubr.msk.bf16.mxu1 %vm2088_vm0, %v2087_v0  ;;  %1844 = vmatpush3.bf16.msra.mxu1 %v1397_v41 }
 0x46b   : > { %1840 = vmatmul.mubr.msk.bf16.vlgmr.msra.gmra.mxu0 %vm964_vm2, %v1203_v39  ;;  %1855 = vmatprep.subr.bf16.mxu1 %v2087_v0 }
 0x46c   : > { %1851 = vmatprep.mubr.msk.bf16.mxu0 %vm2088_vm0, %v2087_v0  ;;  %1850 = vmatpush3.bf16.msra.mxu0 %v1443_v42 }
 0x46d   : > { %1861 = vmatprep.subr.bf16.mxu0 %v2087_v0 }
 0x503   : > { %v1245_v43 = vpop.f32.mrf.mxu1 }
 0x504   : > { %v1389_v45 = vpack.c.bf16 %v1245_v43, %v1245_v43 }
 0x505   : > { %v1823_v47 = vpop.f32.mrf.mxu1  ;;  %v1291_v49 = vpop.f32.mrf.mxu0 }
 0x506   : > { %v1390_v50 = vpack.c.bf16 %v1291_v49, %v1291_v49  ;;  %1846 = vmatmul.mubr.msk.bf16.vlgmr.msra.gmra.mxu1 %vm964_vm2, %v1389_v45  ;;  %v1757_v45 = vld [vmem:[%s2535_s7] ss:$0 sm:$0xff] }
 0x507   : > { %v1248_v52 = vpop.f32.mrf.mxu1  ;;  %v1829_v53 = vpop.f32.mrf.mxu0  ;;  %1856 = vmatpush3.bf16.msra.mxu1 %v1489_v46  ;;  %1857 = vmatprep.mubr.msk.bf16.mxu1 %vm2088_vm0, %v2087_v0 }
 0x508   : > { %1852 = vmatmul.mubr.msk.bf16.vlgmr.msra.gmra.mxu0 %vm964_vm2, %v1390_v50 }
 0x509   : > { %v1824_v54 = vpop.f32.mrf.mxu1  ;;  %v1294_v55 = vpop.f32.mrf.mxu0  ;;  %1862 = vmatpush3.bf16.msra.mxu0 %v1535_v51  ;;  %1863 = vmatprep.mubr.msk.bf16.mxu0 %vm2088_vm0, %v2087_v0 }
 0x50b   : > { %v1830_v56 = vpop.f32.mrf.mxu0 }
 0x529   : > { %v1337_v57 = vpop.f32.mrf.mxu1 }
 0x52a   : > { %v1391_v58 = vpack.c.bf16 %v1337_v57, %v1337_v57 }
 0x52b   : > { %v1835_v59 = vpop.f32.mrf.mxu1  ;;  %v1383_v60 = vpop.f32.mrf.mxu0 }
 0x52c   : > { %v1392_v61 = vpack.c.bf16 %v1383_v60, %v1383_v60  ;;  %1858 = vmatmul.mubr.msk.bf16.vlgmr.msra.gmra.mxu1 %vm964_vm2, %v1391_v58 }
 0x52d   : > { %v1340_v62 = vpop.f32.mrf.mxu1  ;;  %v1841_v63 = vpop.f32.mrf.mxu0 }
 0x52e   : > { %1864 = vmatmul.mubr.msk.bf16.vlgmr.msra.gmra.mxu0 %vm964_vm2, %v1392_v61 }
 0x52f   : > { %v1836_v1 = vpop.f32.mrf.mxu1  ;;  %v1386_v2 = vpop.f32.mrf.mxu0 }
 0x531   : > { %v1842_v4 = vpop.f32.mrf.mxu0 }
 0x5c6   : > { %v1433_v5 = vpop.f32.mrf.mxu1 }
 0x5c7   : > { %v1577_v18 = vsel %vm396_vm1, %v1433_v5, 0.0 }
 0x5c8   : > { %v1847_v7 = vpop.f32.mrf.mxu1  ;;  %v1479_v10 = vpop.f32.mrf.mxu0 }
 0x5c9   : > { %v1578_v17 = vsel %vm396_vm1, %v1479_v10, 0.0 }
 0x5ca   : > { %v1436_v9 = vpop.f32.mrf.mxu1  ;;  %v1853_v0 = vpop.f32.mrf.mxu0  ;;  %v1579_v21 = vadd.f32 %v1578_v17, %v1577_v18 }
 0x5cc   : > { %v1848_v11 = vpop.f32.mrf.mxu1  ;;  %v1482_v13 = vpop.f32.mrf.mxu0 }
 0x5ce   : > { %v1854_v16 = vpop.f32.mrf.mxu0 }
 0x5ec   : > { %v1525_v14 = vpop.f32.mrf.mxu1 }
 0x5ed   : > { %v1580_v12 = vsel %vm396_vm1, %v1525_v14, 0.0 }
 0x5ee   : > { %v1581_v15 = vadd.f32 %v1580_v12, %v1579_v21  ;;  %v1859_v22 = vpop.f32.mrf.mxu1  ;;  %v1571_v23 = vpop.f32.mrf.mxu0 }
 0x5ef   : > { %v1582_v24 = vsel %vm396_vm1, %v1571_v23, 0.0 }
 0x5f0   : > { %v1583_v25 = vadd.f32 %v1582_v24, %v1581_v15  ;;  %v1528_v26 = vpop.f32.mrf.mxu1  ;;  %v1865_v29 = vpop.f32.mrf.mxu0 }
 0x5f2   : > { %v1590_v30 = vadd.f32 %v1755_v27, %v1583_v25  ;;  %v1860_v28 = vpop.f32.mrf.mxu1  ;;  %v1574_v6 = vpop.f32.mrf.mxu0 }
 0x5f4   : > { %v1866_v48 = vpop.f32.mrf.mxu0  ;;  %v1591_v31 = vadd.f32 %v1590_v30, %v2314_v3 }
 0x5f6   : > { %v1594_v8 = vsel %vm396_vm1, %v1591_v31, 0.0 }
 0x5f7   : > { %1595 = vadd.xlane.f32.xlu0 %v1594_v8 }
 0x680   : > { %v1596_v32 = vpop.xlane.xlu0 %1595 }
 0x681   : > { %v1598_v33 = vmul.f32 0.03125, %v1596_v32 }
 0x683   : > { %v1599_v34 = vsub.f32 %v1591_v31, %v1598_v33 }
 0x685   : > { %v1600_v35 = vmul.f32 %v1599_v34, %v1599_v34  ;;  %v1621_v43 = vmul.f32 %v1756_v20, %v1599_v34 }
 0x687   : > { %v1601_v36 = vsel %vm396_vm1, %v1600_v35, 0.0 }
 0x688   : > { %1602 = vadd.xlane.f32.xlu0 %v1601_v36 }
 0x711   : > { %v1603_v37 = vpop.xlane.xlu0 %1602 }
 0x712   : > { %v1605_v38 = vmul.f32 0.032258064, %v1603_v37 }
 0x714   : > { %1952 = vrsqrt.f32 %v1605_v38  ;;  %vm1608_vm5 = vcmp.eq.f32.partialorder %v1605_v38, inf  ;;  %v1611_v41 = vand.u32 2147483648, %v1605_v38  ;;  %vm1610_vm6 = vcmp.eq.f32.partialorder %v1605_v38, 0.0 }
 0x721   : > { %v1953_v39 = vpop.eup %1952 }
 0x722   : > { %v1607_v40 = vmul.f32 %v1953_v39, %v1605_v38 }
 0x724   : > { %v1609_v3 = vsel %vm1608_vm5, %v1605_v38, %v1607_v40 }
 0x725   : > { %v1612_v19 = vsel %vm1610_vm6, %v1611_v41, %v1609_v3 }
 0x726   : > { %v1613_v42 = vadd.f32 1e-06, %v1612_v19 }
 0x728   : > { %1954 = vrcp.f32 %v1613_v42 }
 0x735   : > { %v1955_v44 = vpop.eup %1954 }
 0x736   : > { %v1622_v46 = vmul.f32 %v1955_v44, %v1621_v43 }
 0x738   : > { %v1629_v47 = vadd.f32 %v1757_v45, %v1622_v46 }
 0x73a   : > { %1630 = vst.msk [vmem:[%s369_s25] sm:$0xff] %vm396_vm1, %v1629_v47 }
 0x73b PF: > { %p19_p7 = scmp.ge.s32.totalorder %s2163_s9, 4   ;;  %s2550_s27 = smov %s2072_s28 }
 0x73c   : > { %s2551_s28 = smov %s2076_s29  ;;  %s2552_s29 = smov %s2173_s12 }
 0x73d   : > { %s2553_s30 = smov %s2163_s9  ;;  %21 = sbr.rel (!%p19_p7) target bundleno = 4 (0x4), region = 107 }
 0x742   :  { %1650 = vsyncpa [#allocation3], 1 }
 0x743   :  { %1652 = vsyncpa [#allocation3 + $0x1], 1 }
 0x744   :  { %1653 = vsyncpa [#allocation5], 1 }

</bundles_post_ra>
